<compile_context>
chip_gen: v7x
topology: tpu7x:2x2x1
jax: 0.10.0
libtpu: 0.0.40
codegen_flags: <defaults>
</compile_context>

<pallas_src>
import numpy as np
import jax
import jax.numpy as jnp
from jax.experimental import pallas as pl
from jax.experimental.pallas import tpu as pltpu

BN_EPS = 1e-5  # PyTorch BatchNorm2d default eps

# Fixed architecture constants (28x28 input, im_chan=1, as in the spec).
K, S = 4, 2
H0 = 28
H1 = (H0 - K) // S + 1            # 13
H2 = (H1 - K) // S + 1            # 5
C1, C2, C3 = 16, 32, 64           # hidden, 2*hidden, 2*output_chan
ZDIM = C3 // 2                    # 32
ROW1 = K * H0                     # 112 : lanes of one block-1 input row patch
ROW1P = 128                       # padded contraction dim for block-1 matmul
LAN1 = H1 * C1                    # 208 : valid lanes of one block-1 output row
LAN1P = 256                       # lane-padded block-1 output row
LAN2 = H2 * C2                    # 160 : valid lanes of one block-2 output row
LAN2P = 256                       # lane-padded block-2 output row
OUTP = 128                        # lane-padded encoder output row


# ----------------------------------------------------------------------------
# The fused Pallas kernel (single invocation, everything resident in VMEM,
# all data movement between stages expressed as MXU matmuls on values)
# ----------------------------------------------------------------------------
def _encoder_kernel(xrows_ref, t1_ref, g1_ref, bt1_ref, e1_ref, r1_ref,
                    s2sel_ref, t2_ref, g2_ref, bt2_ref, e2_ref, r2_ref,
                    s3sel_ref, w3_ref, b3_ref, out_ref):
    f32 = jnp.float32
    nb = out_ref.shape[0]

    def batchnorm_relu(y, g_ref, bt_ref, e_ref, r_ref, count):
        # y: (rows, lanes) flattened conv output; padded lanes are exact zeros.
        # Per-channel batch statistics via matmuls with constant 0/1
        # lane->channel reduce (r) and channel->lane broadcast (e) matrices.
        s1 = jnp.dot(jnp.sum(y, axis=0, keepdims=True), r_ref[...],
                     preferred_element_type=f32)
        s2 = jnp.dot(jnp.sum(y * y, axis=0, keepdims=True), r_ref[...],
                     preferred_element_type=f32)
        mu = s1 * (1.0 / count)
        var = s2 * (1.0 / count) - mu * mu     # biased var (torch training BN)
        scale = g_ref[...] * jax.lax.rsqrt(var + BN_EPS)
        shift = bt_ref[...] - mu * scale
        scale_l = jnp.dot(scale, e_ref[...], preferred_element_type=f32)
        shift_l = jnp.dot(shift, e_ref[...], preferred_element_type=f32)
        return jnp.maximum(y * scale_l + shift_l, 0.0)

    # ---- Block 1: Conv(1->16, k4, s2) + BN + ReLU  (28x28 -> 13x13) --------
    # xrows[(n,oh1), kh*28 + w] = x[n, 2*oh1+kh, w];  T1 is the Toeplitz-
    # expanded conv weight, so y1[(n,oh1), ow1*16 + c] is the conv output.
    y1 = jnp.dot(xrows_ref[...], t1_ref[...], preferred_element_type=f32)
    y1n = batchnorm_relu(y1, g1_ref, bt1_ref, e1_ref, r1_ref, nb * H1 * H1)

    # ---- Block 2: Conv(16->32, k4, s2) + BN + ReLU  (13x13 -> 5x5) ---------
    # Row re-layout as 0/1 selection matmuls (replaces the old per-row
    # masked-store loop into a VMEM scratch):
    #   rows_kh[(n,oh2), :] = y1n[n*13 + 2*oh2 + kh, :]
    #   y2 = sum_kh rows_kh @ T2_kh
    y2 = None
    for kh in range(K):
        rows_kh = jnp.dot(s2sel_ref[kh], y1n, preferred_element_type=f32)
        term = jnp.dot(rows_kh, t2_ref[kh], preferred_element_type=f32)
        y2 = term if y2 is None else y2 + term
    y2n = batchnorm_relu(y2, g2_ref, bt2_ref, e2_ref, r2_ref, nb * H2 * H2)

    # ---- Block 3 (final): Conv(32->64, k4, s2) + bias, no BN/ReLU ----------
    # Receptive field = rows 0..3, cols 0..3 of each 5x5 map; cols 0..3 x 32
    # channels are exactly lanes 0..127 (lane-dense, aligned slice).
    y2n_l = y2n[:, 0:K * C2]                                   # (nb*5, 128)
    enc = None
    for kh in range(K):
        patch_kh = jnp.dot(s3sel_ref[kh], y2n_l, preferred_element_type=f32)
        term = jnp.dot(patch_kh, w3_ref[kh], preferred_element_type=f32)
        enc = term if enc is None else enc + term
    enc = enc + b3_ref[...]                                    # (nb, 128)

    # Single lane-dense output slab: lanes 0..31 = mean, 32..63 = std,
    # 64..127 = zero padding.  exp() runs on the EUP (free slot).
    lane = jax.lax.broadcasted_iota(jnp.int32, enc.shape, 1)
    is_logvar = jnp.logical_and(lane >= ZDIM, lane < 2 * ZDIM)
    out_ref[...] = jnp.where(is_logvar, jnp.exp(0.5 * enc), enc)


# ----------------------------------------------------------------------------
# Host-side constant preparation (ONCE per parameter set, not per forward)
# ----------------------------------------------------------------------------
def prepare_encoder_constants(params):
    """Build Toeplitz weights / BN helper matrices on the host, once."""
    w1 = np.asarray(params["w1"], np.float32)   # (16, 1, 4, 4)
    w2 = np.asarray(params["w2"], np.float32)   # (32, 16, 4, 4)
    w3 = np.asarray(params["w3"], np.float32)   # (64, 32, 4, 4)

    # T1[kh*28 + w, ow1*16 + co] = w1[co, 0, kh, w - 2*ow1]   (rows padded to 128,
    # cols padded to 256; padded entries stay exactly zero)
    t1 = np.zeros((ROW1P, LAN1P), np.float32)
    for kh in range(K):
        blk = w1[:, 0, kh, :].T                               # (kw, co)
        for ow in range(H1):
            r0 = kh * H0 + S * ow
            t1[r0:r0 + K, ow * C1:(ow + 1) * C1] = blk

    # T2_kh[w*16 + ci, ow2*32 + co] = w2[co, ci, kh, w - 2*ow2]
    t2 = np.zeros((K, LAN1P, LAN2P), np.float32)
    for kh in range(K):
        blk = np.transpose(w2[:, :, kh, :], (2, 1, 0)).reshape(K * C1, C2)
        for ow in range(H2):
            r0 = S * ow * C1
            t2[kh, r0:r0 + K * C1, ow * C2:(ow + 1) * C2] = blk

    # W3_kh[kw*32 + ci, co] = w3[co, ci, kh, kw]   (output lanes padded 64->128)
    w3p = np.zeros((K, K * C2, OUTP), np.float32)
    w3p[:, :, :C3] = np.transpose(w3, (2, 3, 1, 0)).reshape(K, K * C2, C3)

    b3 = np.zeros((1, OUTP), np.float32)
    b3[0, :C3] = np.asarray(params["b3"], np.float32)

    # 0/1 channel<->lane broadcast (e) / reduce (r) matrices, zero in pad lanes.
    eye1 = np.eye(C1, dtype=np.float32)
    eye2 = np.eye(C2, dtype=np.float32)
    e1 = np.zeros((C1, LAN1P), np.float32); e1[:, :LAN1] = np.tile(eye1, (1, H1))
    r1 = np.zeros((LAN1P, C1), np.float32); r1[:LAN1, :] = np.tile(eye1, (H1, 1))
    e2 = np.zeros((C2, LAN2P), np.float32); e2[:, :LAN2] = np.tile(eye2, (1, H2))
    r2 = np.zeros((LAN2P, C2), np.float32); r2[:LAN2, :] = np.tile(eye2, (H2, 1))

    # Conv biases b1/b2 cancel exactly under training-mode BN -> not used.
    return dict(
        t1=jnp.asarray(t1), t2=jnp.asarray(t2), w3=jnp.asarray(w3p),
        b3=jnp.asarray(b3),
        g1=jnp.asarray(np.asarray(params["g1"], np.float32).reshape(1, C1)),
        bt1=jnp.asarray(np.asarray(params["bt1"], np.float32).reshape(1, C1)),
        g2=jnp.asarray(np.asarray(params["g2"], np.float32).reshape(1, C2)),
        bt2=jnp.asarray(np.asarray(params["bt2"], np.float32).reshape(1, C2)),
        e1=jnp.asarray(e1), r1=jnp.asarray(r1),
        e2=jnp.asarray(e2), r2=jnp.asarray(r2))


def _selection_matrices(nb):
    """0/1 row-selection matrices; depend only on the static batch size, so
    they fold into compile-time constants under jit."""
    s2 = np.zeros((K, nb * H2, nb * H1), np.float32)
    s3 = np.zeros((K, nb, nb * H2), np.float32)
    for kh in range(K):
        for n in range(nb):
            for oh2 in range(H2):
                s2[kh, n * H2 + oh2, n * H1 + S * oh2 + kh] = 1.0
            s3[kh, n, n * H2 + kh] = 1.0
    return jnp.asarray(s2), jnp.asarray(s3)


def _full_spec(arr):
    nd = arr.ndim
    return pl.BlockSpec(arr.shape, lambda i, _nd=nd: (0,) * _nd)


@jax.jit
def encoder_forward(image_nchw, consts):
    """image_nchw: (N, 1, 28, 28) float32.  Returns (mean, std), each (N, 32)."""
    nb = image_nchw.shape[0]
    f32 = jnp.float32
    x = image_nchw[:, 0, :, :].astype(f32)            # im_chan == 1 (as in spec)

    # H-direction patch rows for block 1 (lanes padded 112 -> 128):
    #   xrows[(n, oh1), kh*28 + w] = x[n, 2*oh1 + kh, w]
    xrows = jnp.stack(
        [x[:, S * oh:S * oh + K, :].reshape(nb, ROW1) for oh in range(H1)],
        axis=1).reshape(nb * H1, ROW1)
    xrows = jnp.pad(xrows, ((0, 0), (0, ROW1P - ROW1)))

    s2sel, s3sel = _selection_matrices(nb)            # trace-time constants

    args = (xrows, consts["t1"], consts["g1"], consts["bt1"], consts["e1"],
            consts["r1"], s2sel, consts["t2"], consts["g2"], consts["bt2"],
            consts["e2"], consts["r2"], s3sel, consts["w3"], consts["b3"])

    out = pl.pallas_call(
        _encoder_kernel,
        out_shape=jax.ShapeDtypeStruct((nb, OUTP), f32),
        grid=(1,),
        in_specs=[_full_spec(a) for a in args],
        out_specs=pl.BlockSpec((nb, OUTP), lambda i: (0, 0)),
        compiler_params=pltpu.CompilerParams(
            dimension_semantics=("arbitrary",)),
    )(*args)
    return out[:, :ZDIM], out[:, ZDIM:2 * ZDIM]


# ----------------------------------------------------------------------------
# Deterministic params, pure-JAX reference, self-test
# ----------------------------------------------------------------------------
def init_encoder_params(key, im_chan=1, output_chan=32, hidden_dim=16):
    def conv_init(k, cout, cin, ksz):
        kw_key, kb_key = jax.random.split(k)
        bound = 1.0 / (cin * ksz * ksz) ** 0.5
        w = jax.random.uniform(kw_key, (cout, cin, ksz, ksz), jnp.float32, -bound, bound)
        b = jax.random.uniform(kb_key, (cout,), jnp.float32, -bound, bound)
        return w, b

    k1, k2, k3 = jax.random.split(key, 3)
    w1, b1 = conv_init(k1, hidden_dim, im_chan, K)
    w2, b2 = conv_init(k2, hidden_dim * 2, hidden_dim, K)
    w3, b3 = conv_init(k3, output_chan * 2, hidden_dim * 2, K)
    return dict(
        w1=w1, b1=b1, g1=jnp.ones((hidden_dim,), jnp.float32),
        bt1=jnp.zeros((hidden_dim,), jnp.float32),
        w2=w2, b2=b2, g2=jnp.ones((hidden_dim * 2,), jnp.float32),
        bt2=jnp.zeros((hidden_dim * 2,), jnp.float32),
        w3=w3, b3=b3)


def encoder_reference(image_nchw, params):
    """Pure-JAX reference with the PyTorch module's forward semantics."""
    x = image_nchw.astype(jnp.float32)

    def conv(v, w, b):
        y = jax.lax.conv_general_dilated(
            v, w, window_strides=(S, S), padding="VALID",
            dimension_numbers=("NCHW", "OIHW", "NCHW"),
            precision=jax.lax.Precision.HIGHEST)
        return y + b[None, :, None, None]

    def bn_relu(y, g, bt):
        mu = jnp.mean(y, axis=(0, 2, 3), keepdims=True)
        var = jnp.mean((y - mu) ** 2, axis=(0, 2, 3), keepdims=True)
        yn = (y - mu) * jax.lax.rsqrt(var + BN_EPS)
        return jnp.maximum(yn * g[None, :, None, None] + bt[None, :, None, None], 0.0)

    y = bn_relu(conv(x, params["w1"], params["b1"]), params["g1"], params["bt1"])
    y = bn_relu(conv(y, params["w2"], params["b2"]), params["g2"], params["bt2"])
    y = conv(y, params["w3"], params["b3"])
    enc = y.reshape(y.shape[0], -1)
    z = enc.shape[1] // 2
    return enc[:, :z], jnp.exp(0.5 * enc[:, z:])


if __name__ == "__main__":
    key = jax.random.PRNGKey(0)
    batch, im_chan, output_chan, hidden_dim = 2, 1, 32, 16

    params = init_encoder_params(jax.random.fold_in(key, 1),
                                 im_chan=im_chan, output_chan=output_chan,
                                 hidden_dim=hidden_dim)
    image = jax.random.normal(jax.random.fold_in(key, 2),
                              (batch, im_chan, H0, H0), jnp.float32)

    consts = prepare_encoder_constants(params)       # once per parameter set
    mean, std = encoder_forward(image, consts)
    mean, std = jax.block_until_ready((mean, std))

    assert mean.shape == (batch, output_chan) and std.shape == (batch, output_chan)
    assert bool(jnp.all(jnp.isfinite(mean))) and bool(jnp.all(jnp.isfinite(std)))
    assert bool(jnp.all(std > 0.0))

    ref_mean, ref_std = encoder_reference(image, params)
    assert bool(jnp.allclose(mean, ref_mean, rtol=3e-2, atol=3e-2)), (
        float(jnp.max(jnp.abs(mean - ref_mean))))
    assert bool(jnp.allclose(std, ref_std, rtol=3e-2, atol=3e-2)), (
        float(jnp.max(jnp.abs(std - ref_std))))

    print("KERNEL_OK")
</pallas_src>

<mosaic_0001>
module attributes {stable_mosaic.version = 11 : i64} {
  func.func @_encoder_kernel(%arg0: i32, %arg1: memref<26x128xf32, #tpu.memory_space<vmem>>, %arg2: memref<128x256xf32, #tpu.memory_space<vmem>>, %arg3: memref<1x16xf32, #tpu.memory_space<vmem>>, %arg4: memref<1x16xf32, #tpu.memory_space<vmem>>, %arg5: memref<16x256xf32, #tpu.memory_space<vmem>>, %arg6: memref<256x16xf32, #tpu.memory_space<vmem>>, %arg7: memref<4x10x26xf32, #tpu.memory_space<vmem>>, %arg8: memref<4x256x256xf32, #tpu.memory_space<vmem>>, %arg9: memref<1x32xf32, #tpu.memory_space<vmem>>, %arg10: memref<1x32xf32, #tpu.memory_space<vmem>>, %arg11: memref<32x256xf32, #tpu.memory_space<vmem>>, %arg12: memref<256x32xf32, #tpu.memory_space<vmem>>, %arg13: memref<4x2x10xf32, #tpu.memory_space<vmem>>, %arg14: memref<4x128x128xf32, #tpu.memory_space<vmem>>, %arg15: memref<1x128xf32, #tpu.memory_space<vmem>>, %arg16: memref<2x128xf32, #tpu.memory_space<vmem>>) attributes {dimension_semantics = [#tpu.dimension_semantics<arbitrary>], iteration_bounds = array<i64: 1>, scalar_prefetch = 0 : i64, scratch_operands = 0 : i64, tpu.core_type = #tpu.core_type<tc>, window_params = [{pipeline_mode = #tpu.pipeline_mode<synchronous>, transform_indices = @transform_0, window_bounds = array<i64: 26, 128>}, {pipeline_mode = #tpu.pipeline_mode<synchronous>, transform_indices = @transform_1, window_bounds = array<i64: 128, 256>}, {pipeline_mode = #tpu.pipeline_mode<synchronous>, transform_indices = @transform_2, window_bounds = array<i64: 1, 16>}, {pipeline_mode = #tpu.pipeline_mode<synchronous>, transform_indices = @transform_3, window_bounds = array<i64: 1, 16>}, {pipeline_mode = #tpu.pipeline_mode<synchronous>, transform_indices = @transform_4, window_bounds = array<i64: 16, 256>}, {pipeline_mode = #tpu.pipeline_mode<synchronous>, transform_indices = @transform_5, window_bounds = array<i64: 256, 16>}, {pipeline_mode = #tpu.pipeline_mode<synchronous>, transform_indices = @transform_6, window_bounds = array<i64: 4, 10, 26>}, {pipeline_mode = #tpu.pipeline_mode<synchronous>, transform_indices = @transform_7, window_bounds = array<i64: 4, 256, 256>}, {pipeline_mode = #tpu.pipeline_mode<synchronous>, transform_indices = @transform_8, window_bounds = array<i64: 1, 32>}, {pipeline_mode = #tpu.pipeline_mode<synchronous>, transform_indices = @transform_9, window_bounds = array<i64: 1, 32>}, {pipeline_mode = #tpu.pipeline_mode<synchronous>, transform_indices = @transform_10, window_bounds = array<i64: 32, 256>}, {pipeline_mode = #tpu.pipeline_mode<synchronous>, transform_indices = @transform_11, window_bounds = array<i64: 256, 32>}, {pipeline_mode = #tpu.pipeline_mode<synchronous>, transform_indices = @transform_12, window_bounds = array<i64: 4, 2, 10>}, {pipeline_mode = #tpu.pipeline_mode<synchronous>, transform_indices = @transform_13, window_bounds = array<i64: 4, 128, 128>}, {pipeline_mode = #tpu.pipeline_mode<synchronous>, transform_indices = @transform_14, window_bounds = array<i64: 1, 128>}, {pipeline_mode = #tpu.pipeline_mode<synchronous>, transform_indices = @transform_15, window_bounds = array<i64: 2, 128>}]} {
    %c0 = arith.constant 0 : index
    %c0_0 = arith.constant 0 : index
    %0 = vector.load %arg1[%c0, %c0_0] : memref<26x128xf32, #tpu.memory_space<vmem>>, vector<26x128xf32>
    %c0_1 = arith.constant 0 : index
    %c0_2 = arith.constant 0 : index
    %1 = vector.load %arg2[%c0_1, %c0_2] : memref<128x256xf32, #tpu.memory_space<vmem>>, vector<128x256xf32>
    %cst = arith.constant dense<0.000000e+00> : vector<26x256xf32>
    %2 = tpu.matmul %0, %1, %cst {dimension_numbers = #tpu.dot_dimension_numbers<[1], [0], [0], [1], [0, 0, 1, 1], [], []>} : vector<26x128xf32>, vector<128x256xf32>, vector<26x256xf32> -> vector<26x256xf32>
    %cst_3 = arith.constant dense<0.000000e+00> : vector<256xf32>
    %3 = vector.multi_reduction <add>, %2, %cst_3 [0] : vector<26x256xf32> to vector<256xf32>
    %4 = vector.shape_cast %3 : vector<256xf32> to vector<1x256xf32>
    %c0_4 = arith.constant 0 : index
    %c0_5 = arith.constant 0 : index
    %5 = vector.load %arg6[%c0_4, %c0_5] : memref<256x16xf32, #tpu.memory_space<vmem>>, vector<256x16xf32>
    %cst_6 = arith.constant dense<0.000000e+00> : vector<1x16xf32>
    %6 = tpu.matmul %4, %5, %cst_6 {dimension_numbers = #tpu.dot_dimension_numbers<[1], [0], [0], [1], [0, 0, 1, 1], [], []>} : vector<1x256xf32>, vector<256x16xf32>, vector<1x16xf32> -> vector<1x16xf32>
    %7 = arith.mulf %2, %2 : vector<26x256xf32>
    %cst_7 = arith.constant dense<0.000000e+00> : vector<256xf32>
    %8 = vector.multi_reduction <add>, %7, %cst_7 [0] : vector<26x256xf32> to vector<256xf32>
    %9 = vector.shape_cast %8 : vector<256xf32> to vector<1x256xf32>
    %c0_8 = arith.constant 0 : index
    %c0_9 = arith.constant 0 : index
    %10 = vector.load %arg6[%c0_8, %c0_9] : memref<256x16xf32, #tpu.memory_space<vmem>>, vector<256x16xf32>
    %cst_10 = arith.constant dense<0.000000e+00> : vector<1x16xf32>
    %11 = tpu.matmul %9, %10, %cst_10 {dimension_numbers = #tpu.dot_dimension_numbers<[1], [0], [0], [1], [0, 0, 1, 1], [], []>} : vector<1x256xf32>, vector<256x16xf32>, vector<1x16xf32> -> vector<1x16xf32>
    %cst_11 = arith.constant 2.958580e-03 : f32
    %12 = vector.broadcast %cst_11 : f32 to vector<1x16xf32>
    %13 = arith.mulf %6, %12 : vector<1x16xf32>
    %cst_12 = arith.constant 2.958580e-03 : f32
    %14 = vector.broadcast %cst_12 : f32 to vector<1x16xf32>
    %15 = arith.mulf %11, %14 : vector<1x16xf32>
    %16 = arith.mulf %13, %13 : vector<1x16xf32>
    %17 = arith.subf %15, %16 : vector<1x16xf32>
    %c0_13 = arith.constant 0 : index
    %c0_14 = arith.constant 0 : index
    %18 = vector.load %arg3[%c0_13, %c0_14] : memref<1x16xf32, #tpu.memory_space<vmem>>, vector<1x16xf32>
    %cst_15 = arith.constant 9.99999974E-6 : f32
    %19 = vector.broadcast %cst_15 : f32 to vector<1x16xf32>
    %20 = arith.addf %17, %19 : vector<1x16xf32>
    %21 = math.rsqrt %20 : vector<1x16xf32>
    %22 = arith.mulf %18, %21 : vector<1x16xf32>
    %c0_16 = arith.constant 0 : index
    %c0_17 = arith.constant 0 : index
    %23 = vector.load %arg4[%c0_16, %c0_17] : memref<1x16xf32, #tpu.memory_space<vmem>>, vector<1x16xf32>
    %24 = arith.mulf %13, %22 : vector<1x16xf32>
    %25 = arith.subf %23, %24 : vector<1x16xf32>
    %c0_18 = arith.constant 0 : index
    %c0_19 = arith.constant 0 : index
    %26 = vector.load %arg5[%c0_18, %c0_19] : memref<16x256xf32, #tpu.memory_space<vmem>>, vector<16x256xf32>
    %cst_20 = arith.constant dense<0.000000e+00> : vector<1x256xf32>
    %27 = tpu.matmul %22, %26, %cst_20 {dimension_numbers = #tpu.dot_dimension_numbers<[1], [0], [0], [1], [0, 0, 1, 1], [], []>} : vector<1x16xf32>, vector<16x256xf32>, vector<1x256xf32> -> vector<1x256xf32>
    %c0_21 = arith.constant 0 : index
    %c0_22 = arith.constant 0 : index
    %28 = vector.load %arg5[%c0_21, %c0_22] : memref<16x256xf32, #tpu.memory_space<vmem>>, vector<16x256xf32>
    %cst_23 = arith.constant dense<0.000000e+00> : vector<1x256xf32>
    %29 = tpu.matmul %25, %28, %cst_23 {dimension_numbers = #tpu.dot_dimension_numbers<[1], [0], [0], [1], [0, 0, 1, 1], [], []>} : vector<1x16xf32>, vector<16x256xf32>, vector<1x256xf32> -> vector<1x256xf32>
    %30 = vector.broadcast %27 : vector<1x256xf32> to vector<26x256xf32>
    %31 = arith.mulf %2, %30 : vector<26x256xf32>
    %32 = vector.broadcast %29 : vector<1x256xf32> to vector<26x256xf32>
    %33 = arith.addf %31, %32 : vector<26x256xf32>
    %cst_24 = arith.constant 0.000000e+00 : f32
    %34 = vector.broadcast %cst_24 : f32 to vector<26x256xf32>
    %35 = arith.maximumf %33, %34 : vector<26x256xf32>
    %c0_25 = arith.constant 0 : index
    %c0_26 = arith.constant 0 : index
    %c0_27 = arith.constant 0 : index
    %36 = vector.load %arg7[%c0_25, %c0_26, %c0_27] : memref<4x10x26xf32, #tpu.memory_space<vmem>>, vector<1x10x26xf32>
    %37 = vector.shape_cast %36 : vector<1x10x26xf32> to vector<10x26xf32>
    %cst_28 = arith.constant dense<0.000000e+00> : vector<10x256xf32>
    %38 = tpu.matmul %37, %35, %cst_28 {dimension_numbers = #tpu.dot_dimension_numbers<[1], [0], [0], [1], [0, 0, 1, 1], [], []>} : vector<10x26xf32>, vector<26x256xf32>, vector<10x256xf32> -> vector<10x256xf32>
    %c0_29 = arith.constant 0 : index
    %c0_30 = arith.constant 0 : index
    %c0_31 = arith.constant 0 : index
    %39 = vector.load %arg8[%c0_29, %c0_30, %c0_31] : memref<4x256x256xf32, #tpu.memory_space<vmem>>, vector<1x256x256xf32>
    %40 = vector.shape_cast %39 : vector<1x256x256xf32> to vector<256x256xf32>
    %cst_32 = arith.constant dense<0.000000e+00> : vector<10x256xf32>
    %41 = tpu.matmul %38, %40, %cst_32 {dimension_numbers = #tpu.dot_dimension_numbers<[1], [0], [0], [1], [0, 0, 1, 1], [], []>} : vector<10x256xf32>, vector<256x256xf32>, vector<10x256xf32> -> vector<10x256xf32>
    %c1 = arith.constant 1 : index
    %c0_33 = arith.constant 0 : index
    %c0_34 = arith.constant 0 : index
    %42 = vector.load %arg7[%c1, %c0_33, %c0_34] : memref<4x10x26xf32, #tpu.memory_space<vmem>>, vector<1x10x26xf32>
    %43 = vector.shape_cast %42 : vector<1x10x26xf32> to vector<10x26xf32>
    %cst_35 = arith.constant dense<0.000000e+00> : vector<10x256xf32>
    %44 = tpu.matmul %43, %35, %cst_35 {dimension_numbers = #tpu.dot_dimension_numbers<[1], [0], [0], [1], [0, 0, 1, 1], [], []>} : vector<10x26xf32>, vector<26x256xf32>, vector<10x256xf32> -> vector<10x256xf32>
    %c1_36 = arith.constant 1 : index
    %c0_37 = arith.constant 0 : index
    %c0_38 = arith.constant 0 : index
    %45 = vector.load %arg8[%c1_36, %c0_37, %c0_38] : memref<4x256x256xf32, #tpu.memory_space<vmem>>, vector<1x256x256xf32>
    %46 = vector.shape_cast %45 : vector<1x256x256xf32> to vector<256x256xf32>
    %cst_39 = arith.constant dense<0.000000e+00> : vector<10x256xf32>
    %47 = tpu.matmul %44, %46, %cst_39 {dimension_numbers = #tpu.dot_dimension_numbers<[1], [0], [0], [1], [0, 0, 1, 1], [], []>} : vector<10x256xf32>, vector<256x256xf32>, vector<10x256xf32> -> vector<10x256xf32>
    %48 = arith.addf %41, %47 : vector<10x256xf32>
    %c2 = arith.constant 2 : index
    %c0_40 = arith.constant 0 : index
    %c0_41 = arith.constant 0 : index
    %49 = vector.load %arg7[%c2, %c0_40, %c0_41] : memref<4x10x26xf32, #tpu.memory_space<vmem>>, vector<1x10x26xf32>
    %50 = vector.shape_cast %49 : vector<1x10x26xf32> to vector<10x26xf32>
    %cst_42 = arith.constant dense<0.000000e+00> : vector<10x256xf32>
    %51 = tpu.matmul %50, %35, %cst_42 {dimension_numbers = #tpu.dot_dimension_numbers<[1], [0], [0], [1], [0, 0, 1, 1], [], []>} : vector<10x26xf32>, vector<26x256xf32>, vector<10x256xf32> -> vector<10x256xf32>
    %c2_43 = arith.constant 2 : index
    %c0_44 = arith.constant 0 : index
    %c0_45 = arith.constant 0 : index
    %52 = vector.load %arg8[%c2_43, %c0_44, %c0_45] : memref<4x256x256xf32, #tpu.memory_space<vmem>>, vector<1x256x256xf32>
    %53 = vector.shape_cast %52 : vector<1x256x256xf32> to vector<256x256xf32>
    %cst_46 = arith.constant dense<0.000000e+00> : vector<10x256xf32>
    %54 = tpu.matmul %51, %53, %cst_46 {dimension_numbers = #tpu.dot_dimension_numbers<[1], [0], [0], [1], [0, 0, 1, 1], [], []>} : vector<10x256xf32>, vector<256x256xf32>, vector<10x256xf32> -> vector<10x256xf32>
    %55 = arith.addf %48, %54 : vector<10x256xf32>
    %c3 = arith.constant 3 : index
    %c0_47 = arith.constant 0 : index
    %c0_48 = arith.constant 0 : index
    %56 = vector.load %arg7[%c3, %c0_47, %c0_48] : memref<4x10x26xf32, #tpu.memory_space<vmem>>, vector<1x10x26xf32>
    %57 = vector.shape_cast %56 : vector<1x10x26xf32> to vector<10x26xf32>
    %cst_49 = arith.constant dense<0.000000e+00> : vector<10x256xf32>
    %58 = tpu.matmul %57, %35, %cst_49 {dimension_numbers = #tpu.dot_dimension_numbers<[1], [0], [0], [1], [0, 0, 1, 1], [], []>} : vector<10x26xf32>, vector<26x256xf32>, vector<10x256xf32> -> vector<10x256xf32>
    %c3_50 = arith.constant 3 : index
    %c0_51 = arith.constant 0 : index
    %c0_52 = arith.constant 0 : index
    %59 = vector.load %arg8[%c3_50, %c0_51, %c0_52] : memref<4x256x256xf32, #tpu.memory_space<vmem>>, vector<1x256x256xf32>
    %60 = vector.shape_cast %59 : vector<1x256x256xf32> to vector<256x256xf32>
    %cst_53 = arith.constant dense<0.000000e+00> : vector<10x256xf32>
    %61 = tpu.matmul %58, %60, %cst_53 {dimension_numbers = #tpu.dot_dimension_numbers<[1], [0], [0], [1], [0, 0, 1, 1], [], []>} : vector<10x256xf32>, vector<256x256xf32>, vector<10x256xf32> -> vector<10x256xf32>
    %62 = arith.addf %55, %61 : vector<10x256xf32>
    %cst_54 = arith.constant dense<0.000000e+00> : vector<256xf32>
    %63 = vector.multi_reduction <add>, %62, %cst_54 [0] : vector<10x256xf32> to vector<256xf32>
    %64 = vector.shape_cast %63 : vector<256xf32> to vector<1x256xf32>
    %c0_55 = arith.constant 0 : index
    %c0_56 = arith.constant 0 : index
    %65 = vector.load %arg12[%c0_55, %c0_56] : memref<256x32xf32, #tpu.memory_space<vmem>>, vector<256x32xf32>
    %cst_57 = arith.constant dense<0.000000e+00> : vector<1x32xf32>
    %66 = tpu.matmul %64, %65, %cst_57 {dimension_numbers = #tpu.dot_dimension_numbers<[1], [0], [0], [1], [0, 0, 1, 1], [], []>} : vector<1x256xf32>, vector<256x32xf32>, vector<1x32xf32> -> vector<1x32xf32>
    %67 = arith.mulf %62, %62 : vector<10x256xf32>
    %cst_58 = arith.constant dense<0.000000e+00> : vector<256xf32>
    %68 = vector.multi_reduction <add>, %67, %cst_58 [0] : vector<10x256xf32> to vector<256xf32>
    %69 = vector.shape_cast %68 : vector<256xf32> to vector<1x256xf32>
    %c0_59 = arith.constant 0 : index
    %c0_60 = arith.constant 0 : index
    %70 = vector.load %arg12[%c0_59, %c0_60] : memref<256x32xf32, #tpu.memory_space<vmem>>, vector<256x32xf32>
    %cst_61 = arith.constant dense<0.000000e+00> : vector<1x32xf32>
    %71 = tpu.matmul %69, %70, %cst_61 {dimension_numbers = #tpu.dot_dimension_numbers<[1], [0], [0], [1], [0, 0, 1, 1], [], []>} : vector<1x256xf32>, vector<256x32xf32>, vector<1x32xf32> -> vector<1x32xf32>
    %cst_62 = arith.constant 2.000000e-02 : f32
    %72 = vector.broadcast %cst_62 : f32 to vector<1x32xf32>
    %73 = arith.mulf %66, %72 : vector<1x32xf32>
    %cst_63 = arith.constant 2.000000e-02 : f32
    %74 = vector.broadcast %cst_63 : f32 to vector<1x32xf32>
    %75 = arith.mulf %71, %74 : vector<1x32xf32>
    %76 = arith.mulf %73, %73 : vector<1x32xf32>
    %77 = arith.subf %75, %76 : vector<1x32xf32>
    %c0_64 = arith.constant 0 : index
    %c0_65 = arith.constant 0 : index
    %78 = vector.load %arg9[%c0_64, %c0_65] : memref<1x32xf32, #tpu.memory_space<vmem>>, vector<1x32xf32>
    %cst_66 = arith.constant 9.99999974E-6 : f32
    %79 = vector.broadcast %cst_66 : f32 to vector<1x32xf32>
    %80 = arith.addf %77, %79 : vector<1x32xf32>
    %81 = math.rsqrt %80 : vector<1x32xf32>
    %82 = arith.mulf %78, %81 : vector<1x32xf32>
    %c0_67 = arith.constant 0 : index
    %c0_68 = arith.constant 0 : index
    %83 = vector.load %arg10[%c0_67, %c0_68] : memref<1x32xf32, #tpu.memory_space<vmem>>, vector<1x32xf32>
    %84 = arith.mulf %73, %82 : vector<1x32xf32>
    %85 = arith.subf %83, %84 : vector<1x32xf32>
    %c0_69 = arith.constant 0 : index
    %c0_70 = arith.constant 0 : index
    %86 = vector.load %arg11[%c0_69, %c0_70] : memref<32x256xf32, #tpu.memory_space<vmem>>, vector<32x256xf32>
    %cst_71 = arith.constant dense<0.000000e+00> : vector<1x256xf32>
    %87 = tpu.matmul %82, %86, %cst_71 {dimension_numbers = #tpu.dot_dimension_numbers<[1], [0], [0], [1], [0, 0, 1, 1], [], []>} : vector<1x32xf32>, vector<32x256xf32>, vector<1x256xf32> -> vector<1x256xf32>
    %c0_72 = arith.constant 0 : index
    %c0_73 = arith.constant 0 : index
    %88 = vector.load %arg11[%c0_72, %c0_73] : memref<32x256xf32, #tpu.memory_space<vmem>>, vector<32x256xf32>
    %cst_74 = arith.constant dense<0.000000e+00> : vector<1x256xf32>
    %89 = tpu.matmul %85, %88, %cst_74 {dimension_numbers = #tpu.dot_dimension_numbers<[1], [0], [0], [1], [0, 0, 1, 1], [], []>} : vector<1x32xf32>, vector<32x256xf32>, vector<1x256xf32> -> vector<1x256xf32>
    %90 = vector.broadcast %87 : vector<1x256xf32> to vector<10x256xf32>
    %91 = arith.mulf %62, %90 : vector<10x256xf32>
    %92 = vector.broadcast %89 : vector<1x256xf32> to vector<10x256xf32>
    %93 = arith.addf %91, %92 : vector<10x256xf32>
    %cst_75 = arith.constant 0.000000e+00 : f32
    %94 = vector.broadcast %cst_75 : f32 to vector<10x256xf32>
    %95 = arith.maximumf %93, %94 : vector<10x256xf32>
    %96 = vector.extract_strided_slice %95 {offsets = [0, 0], sizes = [10, 128], strides = [1, 1]} : vector<10x256xf32> to vector<10x128xf32>
    %c0_76 = arith.constant 0 : index
    %c0_77 = arith.constant 0 : index
    %c0_78 = arith.constant 0 : index
    %97 = vector.load %arg13[%c0_76, %c0_77, %c0_78] : memref<4x2x10xf32, #tpu.memory_space<vmem>>, vector<1x2x10xf32>
    %98 = vector.shape_cast %97 : vector<1x2x10xf32> to vector<2x10xf32>
    %cst_79 = arith.constant dense<0.000000e+00> : vector<2x128xf32>
    %99 = tpu.matmul %98, %96, %cst_79 {dimension_numbers = #tpu.dot_dimension_numbers<[1], [0], [0], [1], [0, 0, 1, 1], [], []>} : vector<2x10xf32>, vector<10x128xf32>, vector<2x128xf32> -> vector<2x128xf32>
    %c0_80 = arith.constant 0 : index
    %c0_81 = arith.constant 0 : index
    %c0_82 = arith.constant 0 : index
    %100 = vector.load %arg14[%c0_80, %c0_81, %c0_82] : memref<4x128x128xf32, #tpu.memory_space<vmem>>, vector<1x128x128xf32>
    %101 = vector.shape_cast %100 : vector<1x128x128xf32> to vector<128x128xf32>
    %cst_83 = arith.constant dense<0.000000e+00> : vector<2x128xf32>
    %102 = tpu.matmul %99, %101, %cst_83 {dimension_numbers = #tpu.dot_dimension_numbers<[1], [0], [0], [1], [0, 0, 1, 1], [], []>} : vector<2x128xf32>, vector<128x128xf32>, vector<2x128xf32> -> vector<2x128xf32>
    %c1_84 = arith.constant 1 : index
    %c0_85 = arith.constant 0 : index
    %c0_86 = arith.constant 0 : index
    %103 = vector.load %arg13[%c1_84, %c0_85, %c0_86] : memref<4x2x10xf32, #tpu.memory_space<vmem>>, vector<1x2x10xf32>
    %104 = vector.shape_cast %103 : vector<1x2x10xf32> to vector<2x10xf32>
    %cst_87 = arith.constant dense<0.000000e+00> : vector<2x128xf32>
    %105 = tpu.matmul %104, %96, %cst_87 {dimension_numbers = #tpu.dot_dimension_numbers<[1], [0], [0], [1], [0, 0, 1, 1], [], []>} : vector<2x10xf32>, vector<10x128xf32>, vector<2x128xf32> -> vector<2x128xf32>
    %c1_88 = arith.constant 1 : index
    %c0_89 = arith.constant 0 : index
    %c0_90 = arith.constant 0 : index
    %106 = vector.load %arg14[%c1_88, %c0_89, %c0_90] : memref<4x128x128xf32, #tpu.memory_space<vmem>>, vector<1x128x128xf32>
    %107 = vector.shape_cast %106 : vector<1x128x128xf32> to vector<128x128xf32>
    %cst_91 = arith.constant dense<0.000000e+00> : vector<2x128xf32>
    %108 = tpu.matmul %105, %107, %cst_91 {dimension_numbers = #tpu.dot_dimension_numbers<[1], [0], [0], [1], [0, 0, 1, 1], [], []>} : vector<2x128xf32>, vector<128x128xf32>, vector<2x128xf32> -> vector<2x128xf32>
    %109 = arith.addf %102, %108 : vector<2x128xf32>
    %c2_92 = arith.constant 2 : index
    %c0_93 = arith.constant 0 : index
    %c0_94 = arith.constant 0 : index
    %110 = vector.load %arg13[%c2_92, %c0_93, %c0_94] : memref<4x2x10xf32, #tpu.memory_space<vmem>>, vector<1x2x10xf32>
    %111 = vector.shape_cast %110 : vector<1x2x10xf32> to vector<2x10xf32>
    %cst_95 = arith.constant dense<0.000000e+00> : vector<2x128xf32>
    %112 = tpu.matmul %111, %96, %cst_95 {dimension_numbers = #tpu.dot_dimension_numbers<[1], [0], [0], [1], [0, 0, 1, 1], [], []>} : vector<2x10xf32>, vector<10x128xf32>, vector<2x128xf32> -> vector<2x128xf32>
    %c2_96 = arith.constant 2 : index
    %c0_97 = arith.constant 0 : index
    %c0_98 = arith.constant 0 : index
    %113 = vector.load %arg14[%c2_96, %c0_97, %c0_98] : memref<4x128x128xf32, #tpu.memory_space<vmem>>, vector<1x128x128xf32>
    %114 = vector.shape_cast %113 : vector<1x128x128xf32> to vector<128x128xf32>
    %cst_99 = arith.constant dense<0.000000e+00> : vector<2x128xf32>
    %115 = tpu.matmul %112, %114, %cst_99 {dimension_numbers = #tpu.dot_dimension_numbers<[1], [0], [0], [1], [0, 0, 1, 1], [], []>} : vector<2x128xf32>, vector<128x128xf32>, vector<2x128xf32> -> vector<2x128xf32>
    %116 = arith.addf %109, %115 : vector<2x128xf32>
    %c3_100 = arith.constant 3 : index
    %c0_101 = arith.constant 0 : index
    %c0_102 = arith.constant 0 : index
    %117 = vector.load %arg13[%c3_100, %c0_101, %c0_102] : memref<4x2x10xf32, #tpu.memory_space<vmem>>, vector<1x2x10xf32>
    %118 = vector.shape_cast %117 : vector<1x2x10xf32> to vector<2x10xf32>
    %cst_103 = arith.constant dense<0.000000e+00> : vector<2x128xf32>
    %119 = tpu.matmul %118, %96, %cst_103 {dimension_numbers = #tpu.dot_dimension_numbers<[1], [0], [0], [1], [0, 0, 1, 1], [], []>} : vector<2x10xf32>, vector<10x128xf32>, vector<2x128xf32> -> vector<2x128xf32>
    %c3_104 = arith.constant 3 : index
    %c0_105 = arith.constant 0 : index
    %c0_106 = arith.constant 0 : index
    %120 = vector.load %arg14[%c3_104, %c0_105, %c0_106] : memref<4x128x128xf32, #tpu.memory_space<vmem>>, vector<1x128x128xf32>
    %121 = vector.shape_cast %120 : vector<1x128x128xf32> to vector<128x128xf32>
    %cst_107 = arith.constant dense<0.000000e+00> : vector<2x128xf32>
    %122 = tpu.matmul %119, %121, %cst_107 {dimension_numbers = #tpu.dot_dimension_numbers<[1], [0], [0], [1], [0, 0, 1, 1], [], []>} : vector<2x128xf32>, vector<128x128xf32>, vector<2x128xf32> -> vector<2x128xf32>
    %123 = arith.addf %116, %122 : vector<2x128xf32>
    %c0_108 = arith.constant 0 : index
    %c0_109 = arith.constant 0 : index
    %124 = vector.load %arg15[%c0_108, %c0_109] : memref<1x128xf32, #tpu.memory_space<vmem>>, vector<1x128xf32>
    %125 = vector.broadcast %124 : vector<1x128xf32> to vector<2x128xf32>
    %126 = arith.addf %123, %125 : vector<2x128xf32>
    %127 = tpu.iota {dimensions = array<i32: 1>} : vector<2x128xi32>
    %c32_i32 = arith.constant 32 : i32
    %128 = vector.broadcast %c32_i32 : i32 to vector<2x128xi32>
    %129 = arith.cmpi sge, %127, %128 : vector<2x128xi32>
    %c64_i32 = arith.constant 64 : i32
    %130 = vector.broadcast %c64_i32 : i32 to vector<2x128xi32>
    %131 = arith.cmpi slt, %127, %130 : vector<2x128xi32>
    %132 = arith.andi %129, %131 : vector<2x128xi1>
    %cst_110 = arith.constant 5.000000e-01 : f32
    %133 = vector.broadcast %cst_110 : f32 to vector<2x128xf32>
    %134 = arith.mulf %133, %126 : vector<2x128xf32>
    %135 = math.exp %134 : vector<2x128xf32>
    %136 = arith.select %132, %135, %126 : vector<2x128xi1>, vector<2x128xf32>
    %c0_111 = arith.constant 0 : index
    %c0_112 = arith.constant 0 : index
    %137 = vector.load %arg16[%c0_111, %c0_112] : memref<2x128xf32, #tpu.memory_space<vmem>>, vector<2x128xf32>
    tpu.vector_store %arg16[%c0_111, %c0_112], %136 {strides = array<i32>} : memref<2x128xf32, #tpu.memory_space<vmem>>, vector<2x128xf32>,
    return
  }
  func.func @transform_0(%arg0: i32) -> (i32, i32) {
    %c0_i32 = arith.constant 0 : i32
    %c0_i32_0 = arith.constant 0 : i32
    %c0_i32_1 = arith.constant 0 : i32
    return %c0_i32, %c0_i32_0 : i32, i32
  }
  func.func @transform_1(%arg0: i32) -> (i32, i32) {
    %c0_i32 = arith.constant 0 : i32
    %c0_i32_0 = arith.constant 0 : i32
    %c0_i32_1 = arith.constant 0 : i32
    return %c0_i32, %c0_i32_0 : i32, i32
  }
  func.func @transform_2(%arg0: i32) -> (i32, i32) {
    %c0_i32 = arith.constant 0 : i32
    %c0_i32_0 = arith.constant 0 : i32
    %c0_i32_1 = arith.constant 0 : i32
    return %c0_i32, %c0_i32_0 : i32, i32
  }
  func.func @transform_3(%arg0: i32) -> (i32, i32) {
    %c0_i32 = arith.constant 0 : i32
    %c0_i32_0 = arith.constant 0 : i32
    %c0_i32_1 = arith.constant 0 : i32
    return %c0_i32, %c0_i32_0 : i32, i32
  }
  func.func @transform_4(%arg0: i32) -> (i32, i32) {
    %c0_i32 = arith.constant 0 : i32
    %c0_i32_0 = arith.constant 0 : i32
    %c0_i32_1 = arith.constant 0 : i32
    return %c0_i32, %c0_i32_0 : i32, i32
  }
  func.func @transform_5(%arg0: i32) -> (i32, i32) {
    %c0_i32 = arith.constant 0 : i32
    %c0_i32_0 = arith.constant 0 : i32
    %c0_i32_1 = arith.constant 0 : i32
    return %c0_i32, %c0_i32_0 : i32, i32
  }
  func.func @transform_6(%arg0: i32) -> (i32, i32, i32) {
    %c0_i32 = arith.constant 0 : i32
    %c0_i32_0 = arith.constant 0 : i32
    %c0_i32_1 = arith.constant 0 : i32
    %c0_i32_2 = arith.constant 0 : i32
    return %c0_i32, %c0_i32_0, %c0_i32_1 : i32, i32, i32
  }
  func.func @transform_7(%arg0: i32) -> (i32, i32, i32) {
    %c0_i32 = arith.constant 0 : i32
    %c0_i32_0 = arith.constant 0 : i32
    %c0_i32_1 = arith.constant 0 : i32
    %c0_i32_2 = arith.constant 0 : i32
    return %c0_i32, %c0_i32_0, %c0_i32_1 : i32, i32, i32
  }
  func.func @transform_8(%arg0: i32) -> (i32, i32) {
    %c0_i32 = arith.constant 0 : i32
    %c0_i32_0 = arith.constant 0 : i32
    %c0_i32_1 = arith.constant 0 : i32
    return %c0_i32, %c0_i32_0 : i32, i32
  }
  func.func @transform_9(%arg0: i32) -> (i32, i32) {
    %c0_i32 = arith.constant 0 : i32
    %c0_i32_0 = arith.constant 0 : i32
    %c0_i32_1 = arith.constant 0 : i32
    return %c0_i32, %c0_i32_0 : i32, i32
  }
  func.func @transform_10(%arg0: i32) -> (i32, i32) {
    %c0_i32 = arith.constant 0 : i32
    %c0_i32_0 = arith.constant 0 : i32
    %c0_i32_1 = arith.constant 0 : i32
    return %c0_i32, %c0_i32_0 : i32, i32
  }
  func.func @transform_11(%arg0: i32) -> (i32, i32) {
    %c0_i32 = arith.constant 0 : i32
    %c0_i32_0 = arith.constant 0 : i32
    %c0_i32_1 = arith.constant 0 : i32
    return %c0_i32, %c0_i32_0 : i32, i32
  }
  func.func @transform_12(%arg0: i32) -> (i32, i32, i32) {
    %c0_i32 = arith.constant 0 : i32
    %c0_i32_0 = arith.constant 0 : i32
    %c0_i32_1 = arith.constant 0 : i32
    %c0_i32_2 = arith.constant 0 : i32
    return %c0_i32, %c0_i32_0, %c0_i32_1 : i32, i32, i32
  }
  func.func @transform_13(%arg0: i32) -> (i32, i32, i32) {
    %c0_i32 = arith.constant 0 : i32
    %c0_i32_0 = arith.constant 0 : i32
    %c0_i32_1 = arith.constant 0 : i32
    %c0_i32_2 = arith.constant 0 : i32
    return %c0_i32, %c0_i32_0, %c0_i32_1 : i32, i32, i32
  }
  func.func @transform_14(%arg0: i32) -> (i32, i32) {
    %c0_i32 = arith.constant 0 : i32
    %c0_i32_0 = arith.constant 0 : i32
    %c0_i32_1 = arith.constant 0 : i32
    return %c0_i32, %c0_i32_0 : i32, i32
  }
  func.func @transform_15(%arg0: i32) -> (i32, i32) {
    %c0_i32 = arith.constant 0 : i32
    %c0_i32_0 = arith.constant 0 : i32
    %c0_i32_1 = arith.constant 0 : i32
    return %c0_i32, %c0_i32_0 : i32, i32
  }
}

</mosaic_0001>

<bundles_post_ra>
// kernel: encoder_forward.1
= control target key start
LH: loop header
LB: loop body
LE: loop exit
PB: predicated region body
PF: predicated region fallthrough
CT: control target
= control target key end

     0   :  { %20 = vsyncpa [#allocation3], 0  ;;  %s3717_s18 = smov [#allocation2]   ;;  %s4680_s0 = inlined_call_operand.vmem [shape: f32[26,128], index: 0, kind: input, shape index: {}]   ;;  %s4681_s1 = inlined_call_operand.vmem [shape: f32[128,256], index: 1, kind: input, shape index: {}]   ;;  %s4682_s2 = inlined_call_operand.vmem [shape: f32[1,16], index: 2, kind: input, shape index: {}]   ;;  %s4683_s3 = inlined_call_operand.vmem [shape: f32[1,16], index: 3, kind: input, shape index: {}]   ;;  %s4684_s4 = inlined_call_operand.vmem [shape: f32[16,256], index: 4, kind: input, shape index: {}]   ;;  %s4685_s5 = inlined_call_operand.vmem [shape: f32[256,16], index: 5, kind: input, shape index: {}]   ;;  %s4686_s6 = inlined_call_operand.vmem [shape: f32[4,10,26], index: 6, kind: input, shape index: {}]   ;;  %s4687_s7 = inlined_call_operand.hbm [shape: f32[4,256,256], index: 7, kind: input, shape index: {}]   ;;  %s4688_s8 = inlined_call_operand.vmem [shape: f32[1,32], index: 8, kind: input, shape index: {}]   ;;  %s4689_s9 = inlined_call_operand.vmem [shape: f32[1,32], index: 9, kind: input, shape index: {}]   ;;  %s4690_s10 = inlined_call_operand.vmem [shape: f32[32,256], index: 10, kind: input, shape index: {}]   ;;  %s4691_s11 = inlined_call_operand.vmem [shape: f32[256,32], index: 11, kind: input, shape index: {}]   ;;  %s4692_s12 = inlined_call_operand.vmem [shape: f32[4,2,10], index: 12, kind: input, shape index: {}]   ;;  %s4693_s13 = inlined_call_operand.vmem [shape: f32[4,128,128], index: 13, kind: input, shape index: {}]   ;;  %s4694_s14 = inlined_call_operand.vmem [shape: f32[1,128], index: 14, kind: input, shape index: {}]   ;;  %s4695_s15 = inlined_call_operand.vmem [shape: f32[2,128], index: 15, kind: output, shape index: {}]  }
   0x1   :  { %s40_s19 = sshll.u32 %s3717_s18, 4  ;;  %s3693_s22 = scalar_lea.hbm %s4687_s7, 32768  ;;  %s41_s19 = int_to_ptr.vmem [resolvable:$true] %s40_s19 }
   0x2   :  { %p3694_p0 = scmp.ne.s32.totalorder %s4687_s7, %s3693_s22  ;;  %p3697_p1 = scmp.lt.u32.totalorder %s3693_s22, %s4687_s7 }
   0x4   :  { %p3699_p2 = pnand %p3697_p1, %p3694_p0 }
   0x6   :  { %3702 = shalt.err (!%p3699_p2)
}
   0x7   :  { %s3703_s27 = scalar_lea.vmem %s41_s19, 32768  ;;  %p3708_p4 = scmp.lt.s32.totalorder %s41_s19, %s41_s19 }
   0x8   :  { %p3704_p3 = scmp.ne.s32.totalorder %s41_s19, %s3703_s27  ;;  %p3709_p5 = scmp.lt.s32.totalorder %s3703_s27, %s3703_s27 }
   0xa   :  { %p3710_p6 = por %p3709_p5, %p3708_p4 }
   0xc   :  { %p3711_p7 = pnand %p3710_p6, %p3704_p3 }
   0xe   :  { %3714 = shalt.err (!%p3711_p7)
}
   0xf   :  { %s3718_s28 = smov 256   ;;  %s3719_s29 = smov 16  }
  0x10   :  { %46 = dma.hbm_to_vmem [thread:$0]  %s4687_s7, 32768, %s41_s19, [#allocation3], %s3718_s28, %s3718_s28, %s3719_s29  }
  0x11   :  { %3715 = dma.done.wait [#allocation3], 32768  }
  0x12   :  { %3716 = vsyncadd [#allocation3], 4294934528  ;;  %v3720_v0 = vmov 0.0   ;;  %v69_v1 = vld [vmem:[%s4681_s1 + $0x8] sm:$0xff]  ;;  %v71_v2 = vld [vmem:[%s4681_s1 + $0x18] sm:$0xff]  ;;  %vm191_vm0 = vcmask 1041408  }
  0x13   :  { %164 = vmatprep.mubr.f32.mxu0 %v3720_v0  ;;  %v68_v3 = vld [vmem:[%s4681_s1] sm:$0xff]  ;;  %v3076_v4 = vpack.c.bf16 %v71_v2, %v69_v1  ;;  %v70_v5 = vld [vmem:[%s4681_s1 + $0x10] sm:$0xff]  ;;  %v73_v6 = vld [vmem:[%s4681_s1 + $0x28] sm:$0xff]  ;;  %vm425_vm1 = vcmask 130048   ;;  %vm3721_vm2 = vmmov 1   ;;  %vm616_vm4 = vcmask 211968  }
  0x14   :  { %v75_v7 = vld [vmem:[%s4681_s1 + $0x38] sm:$0xff]  ;;  %v3078_v8 = vpack.c.bf16 %v70_v5, %v68_v3  ;;  %v72_v10 = vld [vmem:[%s4681_s1 + $0x20] sm:$0xff]  ;;  %v74_v11 = vld [vmem:[%s4681_s1 + $0x30] sm:$0xff]  ;;  %vm1766_vm5 = vcmask 261120   ;;  %vm3723_vm6 = vmmov 0   ;;  %vm1928_vm7 = vcmask 80896  }
  0x15   :  { %v3080_v9 = vpack.c.bf16 %v75_v7, %v73_v6  ;;  %v77_v12 = vld [vmem:[%s4681_s1 + $0x48] sm:$0xff]  ;;  %3077 = vmatprep.subr.bf16.mxu0 %v3076_v4  ;;  %v79_v13 = vld [vmem:[%s4681_s1 + $0x58] sm:$0xff]  ;;  %v3082_v14 = vpack.c.bf16 %v74_v11, %v72_v10  ;;  %v76_v16 = vld [vmem:[%s4681_s1 + $0x40] sm:$0xff] }
  0x16   :  { %3079 = vmatpush1.bf16.msra.mxu0 %v3078_v8  ;;  %v3084_v15 = vpack.c.bf16 %v79_v13, %v77_v12  ;;  %v78_v17 = vld [vmem:[%s4681_s1 + $0x50] sm:$0xff]  ;;  %v81_v18 = vld [vmem:[%s4681_s1 + $0x68] sm:$0xff]  ;;  %v83_v19 = vld [vmem:[%s4681_s1 + $0x78] sm:$0xff] }
  0x17   :  { %3081 = vmatprep.subr.bf16.mxu0 %v3080_v9  ;;  %v3086_v20 = vpack.c.bf16 %v78_v17, %v76_v16  ;;  %v3088_v21 = vpack.c.bf16 %v83_v19, %v81_v18  ;;  %v80_v22 = vld [vmem:[%s4681_s1 + $0x60] sm:$0xff]  ;;  %v82_v23 = vld [vmem:[%s4681_s1 + $0x70] sm:$0xff]  ;;  %v85_v24 = vld [vmem:[%s4681_s1 + $0x88] sm:$0xff] }
  0x18   :  { %v87_v25 = vld [vmem:[%s4681_s1 + $0x98] sm:$0xff]  ;;  %v3090_v26 = vpack.c.bf16 %v82_v23, %v80_v22  ;;  %v226_v27 = vld [vmem:[%s4685_s5 + $0x80] sm:$0xff]  ;;  %v227_v28 = vld [vmem:[%s4685_s5 + $0x88] sm:$0xff] }
  0x19   :  { %v210_v29 = vld [vmem:[%s4685_s5] sm:$0xff]  ;;  %v3092_v30 = vpack.c.bf16 %v87_v25, %v85_v24  ;;  %v86_v32 = vld [vmem:[%s4681_s1 + $0x90] sm:$0xff]  ;;  %v3108_v33 = vpack.c.bf16 %v227_v28, %v226_v27  ;;  %v211_v34 = vld [vmem:[%s4685_s5 + $0x8] sm:$0xff] }
  0x1a   :  { %3083 = vmatpush1.bf16.msra.mxu0 %v3082_v14  ;;  %v84_v31 = vld [vmem:[%s4681_s1 + $0x80] sm:$0xff]  ;;  %v89_v35 = vld [vmem:[%s4681_s1 + $0xa8] sm:$0xff]  ;;  %v91_v36 = vld [vmem:[%s4681_s1 + $0xb8] sm:$0xff]  ;;  %v3110_v37 = vpack.c.bf16 %v211_v34, %v210_v29 }
  0x1b   :  { %3085 = vmatprep.subr.bf16.mxu0 %v3084_v15  ;;  %3109 = vmatprep.subr.bf16.mxu1 %v3108_v33  ;;  %v3094_v38 = vpack.c.bf16 %v86_v32, %v84_v31  ;;  %v3096_v39 = vpack.c.bf16 %v91_v36, %v89_v35  ;;  %v88_v40 = vld [vmem:[%s4681_s1 + $0xa0] sm:$0xff]  ;;  %v90_v41 = vld [vmem:[%s4681_s1 + $0xb0] sm:$0xff]  ;;  %v93_v42 = vld [vmem:[%s4681_s1 + $0xc8] sm:$0xff] }
  0x1c   :  { %3111 = vmatpush3.bf16.msra.mxu1 %v3110_v37  ;;  %v95_v43 = vld [vmem:[%s4681_s1 + $0xd8] sm:$0xff]  ;;  %v3098_v44 = vpack.c.bf16 %v90_v41, %v88_v40  ;;  %v92_v46 = vld [vmem:[%s4681_s1 + $0xc0] sm:$0xff]  ;;  %v94_v47 = vld [vmem:[%s4681_s1 + $0xd0] sm:$0xff] }
  0x1d   :  { %v3100_v45 = vpack.c.bf16 %v95_v43, %v93_v42  ;;  %v97_v48 = vld [vmem:[%s4681_s1 + $0xe8] sm:$0xff]  ;;  %v99_v49 = vld [vmem:[%s4681_s1 + $0xf8] sm:$0xff]  ;;  %v3102_v50 = vpack.c.bf16 %v94_v47, %v92_v46  ;;  %v96_v52 = vld [vmem:[%s4681_s1 + $0xe0] sm:$0xff] }
  0x1e   :  { %3087 = vmatpush1.bf16.msra.mxu0 %v3086_v20  ;;  %v3104_v51 = vpack.c.bf16 %v99_v49, %v97_v48  ;;  %v98_v53 = vld [vmem:[%s4681_s1 + $0xf0] sm:$0xff]  ;;  %v64_v55 = vld [vmem:[%s4680_s0] sm:$0xff]  ;;  %v65_v56 = vld [vmem:[%s4680_s0 + $0x8] sm:$0xff] }
  0x1f   :  { %3089 = vmatprep.subr.bf16.mxu0 %v3088_v21  ;;  %v3106_v54 = vpack.c.bf16 %v98_v53, %v96_v52  ;;  %v66_v57 = vld [vmem:[%s4680_s0 + $0x10] sm:$0xff]  ;;  %v67_v58 = vld [vmem:[%s4680_s0 + $0x18] sm:$0x3]  ;;  %v230_v2 = vld [vmem:[%s4685_s5 + $0xa0] sm:$0xff] }
  0x20   :  { %v228_v59 = vld [vmem:[%s4685_s5 + $0x90] sm:$0xff]  ;;  %v229_v60 = vld [vmem:[%s4685_s5 + $0x98] sm:$0xff]  ;;  %v231_v3 = vld [vmem:[%s4685_s5 + $0xa8] sm:$0xff] }
  0x21   :  { %v3112_v61 = vpack.c.bf16 %v229_v60, %v228_v59  ;;  %v212_v62 = vld [vmem:[%s4685_s5 + $0x10] sm:$0xff]  ;;  %v213_v63 = vld [vmem:[%s4685_s5 + $0x18] sm:$0xff]  ;;  %v3116_v4 = vpack.c.bf16 %v231_v3, %v230_v2  ;;  %v214_v5 = vld [vmem:[%s4685_s5 + $0x20] sm:$0xff] }
  0x22   :  { %3091 = vmatpush1.bf16.msra.mxu0 %v3090_v26  ;;  %v3114_v1 = vpack.c.bf16 %v213_v63, %v212_v62  ;;  %v215_v6 = vld [vmem:[%s4685_s5 + $0x28] sm:$0xff]  ;;  %v232_v8 = vld [vmem:[%s4685_s5 + $0xb0] sm:$0xff]  ;;  %v233_v9 = vld [vmem:[%s4685_s5 + $0xb8] sm:$0xff] }
  0x23   :  { %3093 = vmatprep.subr.bf16.mxu0 %v3092_v30  ;;  %3113 = vmatprep.subr.bf16.mxu1 %v3112_v61  ;;  %v3118_v7 = vpack.c.bf16 %v215_v6, %v214_v5  ;;  %v3120_v10 = vpack.c.bf16 %v233_v9, %v232_v8  ;;  %v216_v11 = vld [vmem:[%s4685_s5 + $0x30] sm:$0xff]  ;;  %v217_v12 = vld [vmem:[%s4685_s5 + $0x38] sm:$0xff]  ;;  %v234_v14 = vld [vmem:[%s4685_s5 + $0xc0] sm:$0xff] }
  0x24   :  { %3115 = vmatpush3.bf16.msra.mxu1 %v3114_v1  ;;  %v3122_v13 = vpack.c.bf16 %v217_v12, %v216_v11  ;;  %v235_v15 = vld [vmem:[%s4685_s5 + $0xc8] sm:$0xff]  ;;  %v218_v17 = vld [vmem:[%s4685_s5 + $0x40] sm:$0xff]  ;;  %v236_v20 = vld [vmem:[%s4685_s5 + $0xd0] sm:$0xff] }
  0x25   :  { %3117 = vmatprep.subr.bf16.mxu1 %v3116_v4  ;;  %v3124_v16 = vpack.c.bf16 %v235_v15, %v234_v14  ;;  %v219_v18 = vld [vmem:[%s4685_s5 + $0x48] sm:$0xff]  ;;  %v237_v21 = vld [vmem:[%s4685_s5 + $0xd8] sm:$0xff]  ;;  %v220_v23 = vld [vmem:[%s4685_s5 + $0x50] sm:$0xff] }
  0x26   :  { %3095 = vmatpush1.bf16.msra.mxu0 %v3094_v38  ;;  %v3126_v19 = vpack.c.bf16 %v219_v18, %v218_v17  ;;  %v3128_v22 = vpack.c.bf16 %v237_v21, %v236_v20  ;;  %v221_v24 = vld [vmem:[%s4685_s5 + $0x58] sm:$0xff]  ;;  %v238_v26 = vld [vmem:[%s4685_s5 + $0xe0] sm:$0xff]  ;;  %v239_v27 = vld [vmem:[%s4685_s5 + $0xe8] sm:$0xff] }
  0x27   :  { %3097 = vmatprep.subr.bf16.mxu0 %v3096_v39  ;;  %v3130_v25 = vpack.c.bf16 %v221_v24, %v220_v23  ;;  %v3132_v28 = vpack.c.bf16 %v239_v27, %v238_v26  ;;  %v222_v29 = vld [vmem:[%s4685_s5 + $0x60] sm:$0xff]  ;;  %v223_v30 = vld [vmem:[%s4685_s5 + $0x68] sm:$0xff]  ;;  %v240_v32 = vld [vmem:[%s4685_s5 + $0xf0] sm:$0xff] }
  0x28   :  { %3119 = vmatpush3.bf16.msra.mxu1 %v3118_v7  ;;  %v3134_v31 = vpack.c.bf16 %v223_v30, %v222_v29  ;;  %v224_v35 = vld [vmem:[%s4685_s5 + $0x70] sm:$0xff]  ;;  %v225_v36 = vld [vmem:[%s4685_s5 + $0x78] sm:$0xff]  ;;  %vm4106_vm3 = vmpackc.low %vm191_vm0, %vm3721_vm2 }
  0x29   :  { %3121 = vmatprep.subr.bf16.mxu1 %v3120_v10 }
  0x2a   :  { %3099 = vmatpush1.bf16.msra.mxu0 %v3098_v44 }
  0x2b   :  { %3101 = vmatprep.subr.bf16.mxu0 %v3100_v45 }
  0x2c   :  { %3123 = vmatpush3.bf16.msra.mxu1 %v3122_v13 }
  0x2d   :  { %3125 = vmatprep.subr.bf16.mxu1 %v3124_v16 }
  0x2e   :  { %3103 = vmatpush1.bf16.msra.mxu0 %v3102_v50 }
  0x2f   :  { %3105 = vmatprep.subr.bf16.mxu0 %v3104_v51 }
  0x30   :  { %3127 = vmatpush3.bf16.msra.mxu1 %v3126_v19 }
  0x31   :  { %3129 = vmatprep.subr.bf16.mxu1 %v3128_v22 }
  0x32   :  { %3107 = vmatpush1.bf16.msra.mxu0 %v3106_v54 }
  0x33   :  { %3141 = vmatprep.subr.bf16.mxu0 %v3108_v33  ;;  %v241_v33 = vld [vmem:[%s4685_s5 + $0xf8] sm:$0xff] }
  0x34   :  { %3131 = vmatpush3.bf16.msra.mxu1 %v3130_v25  ;;  %v3136_v34 = vpack.c.bf16 %v241_v33, %v240_v32  ;;  %v424_v32 = vld [vmem:[%s4684_s4 + $0x18] sm:$0xff]  ;;  %v421_v33 = vld [vmem:[%s4684_s4] sm:$0xff] }
  0x35   :  { %165 = vmatmul.mubr.f32.vlgmr.msra.gmra.mrb[0].mxu0 %v64_v55  ;;  %3133 = vmatprep.subr.bf16.mxu1 %v3132_v28 }
  0x36   :  { %170 = vmatprep.mubr.f32.mxu0 %v3720_v0  ;;  %3143 = vmatpush3.bf16.msra.mxu0 %v3110_v37  ;;  %v3138_v37 = vpack.c.bf16 %v225_v36, %v224_v35  ;;  %v423_v35 = vld [vmem:[%s4684_s4 + $0x10] sm:$0xff] }
  0x37   :  { %3145 = vmatprep.subr.bf16.mxu0 %v3112_v61  ;;  %v3174_v36 = vpack.c.bf16 %v423_v35, %v421_v33  ;;  %v858_v33 = vld [vmem:[#allocation2 + $0x208] sm:$0xff] }
  0x38   :  { %3135 = vmatpush3.bf16.msra.mxu1 %v3134_v31  ;;  %v615_v35 = vld [vmem:[%s4686_s6 + $0x8] sm:$0x3] }
  0x39   :  { %171 = vmatmul.mubr.f32.gmra.mrb[2].mxu0 %v65_v56  ;;  %3137 = vmatprep.subr.bf16.mxu1 %v3136_v34 }
  0x3a   :  { %176 = vmatprep.mubr.f32.mxu0 %v3720_v0  ;;  %3147 = vmatpush3.bf16.msra.mxu0 %v3114_v1 }
  0x3b   :  { %3149 = vmatprep.subr.bf16.mxu0 %v3116_v4 }
  0x3c   :  { %3139 = vmatpush3.bf16.msra.mxu1 %v3138_v37 }
  0x3d   :  { %177 = vmatmul.mubr.f32.gmra.mrb[4].mxu0 %v66_v57 }
  0x3e   :  { %182 = vmatprep.mubr.f32.mxu0 %v3720_v0  ;;  %3151 = vmatpush3.bf16.msra.mxu0 %v3118_v7 }
  0x3f   :  { %3153 = vmatprep.subr.bf16.mxu0 %v3120_v10 }
  0x41   :  { %183 = vmatmul.mubr.f32.gmra.mrb[6].mxu0 %v67_v58 }
  0x42   :  { %3155 = vmatpush3.bf16.msra.mxu0 %v3122_v13 }
  0x43   :  { %3157 = vmatprep.subr.bf16.mxu0 %v3124_v16 }
  0x46   :  { %3159 = vmatpush3.bf16.msra.mxu0 %v3126_v19 }
  0x47   :  { %3161 = vmatprep.subr.bf16.mxu0 %v3128_v22 }
  0x4a   :  { %3163 = vmatpush3.bf16.msra.mxu0 %v3130_v25 }
  0x4b   :  { %3165 = vmatprep.subr.bf16.mxu0 %v3132_v28 }
  0x4e   :  { %3167 = vmatpush3.bf16.msra.mxu0 %v3134_v31  ;;  %v422_v31 = vld [vmem:[%s4684_s4 + $0x8] sm:$0xff] }
  0x4f   :  { %3169 = vmatprep.subr.bf16.mxu0 %v3136_v34  ;;  %v3172_v34 = vpack.c.bf16 %v424_v32, %v422_v31  ;;  %v614_v31 = vld [vmem:[%s4686_s6] sm:$0xff] }
  0x50   :  { %v2614_v32 = vld [vmem:[%s4686_s6 + $0x20] sm:$0xff] }
  0x51   :  { %3177 = vmatprep.subr.bf16.mxu1 %v3172_v34 }
  0x52   :  { %3171 = vmatpush3.bf16.msra.mxu0 %v3138_v37 }
  0x53   :  { %3173 = vmatprep.subr.bf16.mxu0 %v3172_v34  ;;  %v860_v34 = vld [vmem:[#allocation2 + $0x218] sm:$0xff] }
 0x108   :  { %v4024_v38 = vpop.f32.mrb[0].mxu0 }
 0x109   :  { %v4026_v39 = vpop.f32.mrb[1].mxu0  ;;  %v312_v41 = vmul.f32 %v4024_v38, %v4024_v38 }
 0x10a   :  { %v313_v45 = vmul.f32 %v4026_v39, %v4026_v39 }
 0x10c   :  { %v4028_v40 = vpop.f32.mrb[2].mxu0 }
 0x10d   :  { %v189_v42 = vadd.f32 %v4028_v40, %v4024_v38  ;;  %v314_v43 = vmul.f32 %v4028_v40, %v4028_v40  ;;  %v4036_v44 = vpop.f32.mrb[3].mxu0 }
 0x10e   :  { %v200_v46 = vadd.f32 %v4036_v44, %v4026_v39  ;;  %v315_v47 = vmul.f32 %v4036_v44, %v4036_v44 }
 0x10f   :  { %v320_v48 = vadd.f32 %v314_v43, %v312_v41 }
 0x110   :  { %v330_v49 = vadd.f32 %v315_v47, %v313_v45  ;;  %v4044_v50 = vpop.f32.mrb[4].mxu0 }
 0x111   :  { %v190_v51 = vadd.f32 %v189_v42, %v4044_v50  ;;  %v316_v52 = vmul.f32 %v4044_v50, %v4044_v50  ;;  %v4049_v53 = vpop.f32.mrb[5].mxu0 }
 0x112   :  { %v201_v54 = vadd.f32 %v200_v46, %v4049_v53  ;;  %v317_v55 = vmul.f32 %v4049_v53, %v4049_v53 }
 0x113   :  { %v321_v56 = vadd.f32 %v320_v48, %v316_v52 }
 0x114   :  { %v331_v57 = vadd.f32 %v330_v49, %v317_v55  ;;  %v4054_v58 = vpop.f32.mrb[6].mxu0 }
 0x115   :  { %v192_v59 = vsel %vm191_vm0, %v4054_v58, 0.0  ;;  %v318_v60 = vmul.f32 %v4054_v58, %v4054_v58  ;;  %v4060_v61 = vpop.f32.mrb[7].mxu0 }
 0x116   :  { %v193_v62 = vadd.f32 %v192_v59, %v190_v51  ;;  %v202_v63 = vsel %vm191_vm0, %v4060_v61, 0.0  ;;  %v319_v1 = vmul.f32 %v4060_v61, %v4060_v61 }
 0x117   :  { %v322_v2 = vsel %vm191_vm0, %v318_v60, 0.0  ;;  %v203_v3 = vadd.f32 %v202_v63, %v201_v54  ;;  %v414_v54 = vld [vmem:[%s4682_s2] sm:$0x1] }
 0x118   :  { %v194_v4 = vrot.slane %v193_v62, 4  ;;  %v323_v5 = vadd.f32 %v322_v2, %v321_v56  ;;  %v332_v6 = vsel %vm191_vm0, %v319_v1, 0.0 }
 0x119   :  { %v333_v7 = vadd.f32 %v332_v6, %v331_v57  ;;  %v204_v8 = vrot.slane %v203_v3, 4  ;;  %v418_v57 = vld [vmem:[%s4683_s3] sm:$0x1] }
 0x11a   :  { %v195_v9 = vadd.f32 %v194_v4, %v193_v62  ;;  %v324_v10 = vrot.slane %v323_v5, 4  ;;  %v574_v62 = vlaneseq }
 0x11b   :  { %v334_v11 = vrot.slane %v333_v7, 4  ;;  %v205_v12 = vadd.f32 %v204_v8, %v203_v3 }
 0x11c   :  { %v325_v13 = vadd.f32 %v324_v10, %v323_v5  ;;  %v196_v14 = vrot.slane %v195_v9, 2  ;;  %v575_v63 = vshrl.u32 %v574_v62, 7 }
 0x11d   :  { %v206_v15 = vrot.slane %v205_v12, 2  ;;  %v335_v16 = vadd.f32 %v334_v11, %v333_v7 }
 0x11e   :  { %v326_v17 = vrot.slane %v325_v13, 2  ;;  %v197_v18 = vadd.f32 %v196_v14, %v195_v9  ;;  %v4091_v1 = vsub.s32 0, %v575_v63  ;;  %v865_v63 = vld [vmem:[#allocation2 + $0x240] sm:$0xff] }
 0x11f   :  { %v207_v19 = vadd.f32 %v206_v15, %v205_v12  ;;  %v336_v20 = vrot.slane %v335_v16, 2 }
 0x120   :  { %v327_v21 = vadd.f32 %v326_v17, %v325_v13  ;;  %v198_v22 = vrot.slane %v197_v18, 1 }
 0x121   :  { %v208_v23 = vrot.slane %v207_v19, 1  ;;  %v337_v24 = vadd.f32 %v336_v20, %v335_v16 }
 0x122   :  { %v328_v25 = vrot.slane %v327_v21, 1  ;;  %v199_v28 = vadd.f32 %v198_v22, %v197_v18 }
 0x123   :  { %v209_v26 = vadd.f32 %v208_v23, %v207_v19  ;;  %v338_v27 = vrot.slane %v337_v24, 1 }
 0x124   :  { %v329_v30 = vadd.f32 %v328_v25, %v327_v21 }
 0x125   :  { %306 = vmatprep.mubr.f32.mxu1 %v209_v26  ;;  %v339_v29 = vadd.f32 %v338_v27, %v337_v24 }
 0x126   :  { %307 = vmatmul.mubr.f32.vlgmr.msra.gmra.mrb[0].mxu1 %v199_v28 }
 0x127   :  { %404 = vmatprep.mubr.f32.mxu0 %v339_v29  ;;  %567 = vmatprep.mubr.f32.mxu1 %v3720_v0 }
 0x128   :  { %405 = vmatmul.mubr.f32.vlgmr.msra.gmra.mrb[8].mxu0 %v329_v30  ;;  %3179 = vmatpush1.bf16.msra.mxu1 %v3174_v36 }
 0x129   :  { %493 = vmatprep.mubr.f32.mxu0 %v3720_v0  ;;  %3175 = vmatpush1.bf16.msra.mxu0 %v3174_v36  ;;  %v2615_v36 = vld [vmem:[%s4686_s6 + $0x28] sm:$0x3] }
 0x1f9   :  { %v2720_v37 = vpop.f32.mrb[0].mxu1 }
 0x1fa   :  { %v2721_v41 = vpop.f32.mrb[1].mxu1 }
 0x1fb   :  { %v2722_v42 = vadd.f32 %v2721_v41, %v2720_v37  ;;  %v2755_v43 = vpop.f32.mrb[8].mxu0  ;;  %v3200_v37 = vpack.c.bf16 %v860_v34, %v858_v33  ;;  %v857_v41 = vld [vmem:[#allocation2 + $0x200] sm:$0xff]  ;;  %v896_v33 = vld [vmem:[#allocation2 + $0x338] sm:$0xff] }
 0x1fc   :  { %v2756_v45 = vpop.f32.mrb[9].mxu0 }
 0x1fd   :  { %v410_v46 = vmul.f32 0.00295858, %v2722_v42  ;;  %v2757_v47 = vadd.f32 %v2756_v45, %v2755_v43  ;;  %v859_v42 = vld [vmem:[#allocation2 + $0x210] sm:$0xff]  ;;  %v862_v43 = vld [vmem:[#allocation2 + $0x228] sm:$0xff]  ;;  %v864_v45 = vld [vmem:[#allocation2 + $0x238] sm:$0xff] }
 0x1ff   :  { %v412_v48 = vmul.f32 %v410_v46, %v410_v46  ;;  %v411_v49 = vmul.f32 0.00295858, %v2757_v47  ;;  %v3202_v47 = vpack.c.bf16 %v859_v42, %v857_v41  ;;  %v898_v41 = vld [vmem:[#allocation2 + $0x348] sm:$0xff]  ;;  %v900_v42 = vld [vmem:[#allocation2 + $0x358] sm:$0xff] }
 0x201   :  { %v413_v51 = vsub.f32 %v411_v49, %v412_v48  ;;  %v2620_v48 = vld [vmem:[%s4686_s6 + $0x30] sm:$0xff]  ;;  %v3204_v49 = vpack.c.bf16 %v864_v45, %v862_v43  ;;  %v3240_v45 = vpack.c.bf16 %v900_v42, %v898_v41 }
 0x203   :  { %v415_v52 = vadd.f32 1e-05, %v413_v51  ;;  %v861_v51 = vld [vmem:[#allocation2 + $0x220] sm:$0xff] }
 0x205   :  { %3687 = vrsqrt.f32 %v415_v52  ;;  %v863_v52 = vld [vmem:[#allocation2 + $0x230] sm:$0xff] }
 0x20f   :  { %v3688_v55 = vpop.eup %3687 }
 0x210   :  { %v417_v56 = vmul.f32 %v3688_v55, %v414_v54  ;;  %v866_v54 = vld [vmem:[#allocation2 + $0x248] sm:$0xff]  ;;  %v868_v55 = vld [vmem:[#allocation2 + $0x258] sm:$0xff] }
 0x212   :  { %2602 = vmatmul.mubr.msk.f32.vlgmr.msra.gmra.mrb[10].mxu0 %vm425_vm1, %v417_v56  ;;  %v419_v59 = vmul.f32 %v417_v56, %v410_v46  ;;  %v2608_v46 = vld [vmem:[%s4686_s6 + $0x10] sm:$0xff]  ;;  %v2609_v56 = vld [vmem:[%s4686_s6 + $0x18] sm:$0x3] }
 0x213   :  { %1148 = vmatprep.mubr.f32.mxu0 %v3720_v0 }
 0x214   :  { %v420_v60 = vsub.f32 %v418_v57, %v419_v59  ;;  %v3206_v57 = vpack.c.bf16 %v863_v52, %v861_v51  ;;  %v2621_v59 = vld [vmem:[%s4686_s6 + $0x38] sm:$0x3] }
 0x216   :  { %2603 = vmatmul.mubr.msk.f32.vlgmr.msra.gmra.mrb[2].mxu1 %vm425_vm1, %v420_v60  ;;  %v3208_v60 = vpack.c.bf16 %v868_v55, %v866_v54  ;;  %v901_v54 = vld [vmem:[#allocation2 + $0x360] sm:$0xff]  ;;  %v903_v55 = vld [vmem:[#allocation2 + $0x370] sm:$0xff] }
 0x217   :  { %693 = vmatprep.mubr.f32.mxu1 %v3720_v0 }
 0x2e5   :  { %v495_v2 = vpop.f32.mrb[10].mxu0 }
 0x2e6   :  { %v577_v3 = vrot.slane %v495_v2, %v4091_v1  ;;  %v497_v4 = vpop.f32.mrb[11].mxu0  ;;  %v867_v2 = vld [vmem:[#allocation2 + $0x250] sm:$0xff] }
 0x2e7   :  { %v581_v5 = vrot.slane %v497_v4, %v4091_v1  ;;  %v872_v4 = vld [vmem:[#allocation2 + $0x278] sm:$0xff] }
 0x2e8   :  { %v582_v6 = vmul.f32 %v577_v3, %v4024_v38  ;;  %v584_v7 = vmul.f32 %v577_v3, %v4028_v40  ;;  %v586_v8 = vmul.f32 %v577_v3, %v4044_v50  ;;  %v588_v9 = vmul.f32 %v577_v3, %v4054_v58  ;;  %v870_v3 = vld [vmem:[#allocation2 + $0x268] sm:$0xff] }
 0x2e9   :  { %v583_v10 = vmul.f32 %v581_v5, %v4026_v39  ;;  %v585_v11 = vmul.f32 %v581_v5, %v4036_v44  ;;  %v587_v12 = vmul.f32 %v581_v5, %v4049_v53  ;;  %v589_v13 = vmul.f32 %v581_v5, %v4060_v61  ;;  %v569_v14 = vpop.f32.mrb[2].mxu1 }
 0x2ea   :  { %v593_v15 = vrot.slane %v569_v14, %v4091_v1  ;;  %v571_v16 = vpop.f32.mrb[3].mxu1  ;;  %v3210_v5 = vpack.c.bf16 %v867_v2, %v865_v63  ;;  %v875_v14 = vld [vmem:[#allocation2 + $0x290] sm:$0xff]  ;;  %v905_v63 = vld [vmem:[#allocation2 + $0x380] sm:$0xff] }
 0x2eb   :  { %v597_v38 = vrot.slane %v571_v16, %v4091_v1  ;;  %v880_v16 = vld [vmem:[#allocation2 + $0x2b8] sm:$0xff]  ;;  %v907_v2 = vld [vmem:[#allocation2 + $0x390] sm:$0xff] }
 0x2ec   :  { %v598_v17 = vadd.f32 %v593_v15, %v582_v6  ;;  %v600_v40 = vadd.f32 %v593_v15, %v584_v7  ;;  %v602_v18 = vadd.f32 %v593_v15, %v586_v8  ;;  %v604_v50 = vadd.f32 %v593_v15, %v588_v9  ;;  %v869_v7 = vld [vmem:[#allocation2 + $0x260] sm:$0xff]  ;;  %v871_v8 = vld [vmem:[#allocation2 + $0x270] sm:$0xff]  ;;  %v874_v9 = vld [vmem:[#allocation2 + $0x288] sm:$0xff] }
 0x2ed   :  { %v599_v19 = vadd.f32 %v597_v38, %v583_v10  ;;  %v601_v58 = vadd.f32 %v597_v38, %v585_v11  ;;  %v603_v20 = vadd.f32 %v597_v38, %v587_v12  ;;  %v605_v39 = vadd.f32 %v597_v38, %v589_v13  ;;  %v876_v10 = vld [vmem:[#allocation2 + $0x298] sm:$0xff]  ;;  %v873_v13 = vld [vmem:[#allocation2 + $0x280] sm:$0xff]  ;;  %v878_v15 = vld [vmem:[#allocation2 + $0x2a8] sm:$0xff] }
 0x2ee   :  { %v606_v21 = vmax.f32 %v598_v17, 0.0  ;;  %v608_v44 = vmax.f32 %v600_v40, 0.0  ;;  %v610_v22 = vmax.f32 %v602_v18, 0.0  ;;  %v612_v53 = vmax.f32 %v604_v50, 0.0  ;;  %v877_v40 = vld [vmem:[#allocation2 + $0x2a0] sm:$0xff]  ;;  %v879_v18 = vld [vmem:[#allocation2 + $0x2b0] sm:$0xff] }
 0x2ef   :  { %v607_v23 = vmax.f32 %v599_v19, 0.0  ;;  %v609_v61 = vmax.f32 %v601_v58, 0.0  ;;  %v611_v24 = vmax.f32 %v603_v20, 0.0  ;;  %v613_v25 = vmax.f32 %v605_v39, 0.0  ;;  %v882_v50 = vld [vmem:[#allocation2 + $0x2c8] sm:$0xff]  ;;  %v884_v19 = vld [vmem:[#allocation2 + $0x2d8] sm:$0xff] }
 0x2f0   :  { %v3187_v26 = vpack.c.bf16 %v612_v53, %v610_v22  ;;  %v3182_v27 = vpack.c.bf16 %v608_v44, %v606_v21  ;;  %v3212_v6 = vpack.c.bf16 %v872_v4, %v870_v3  ;;  %v3214_v11 = vpack.c.bf16 %v871_v8, %v869_v7  ;;  %v881_v39 = vld [vmem:[#allocation2 + $0x2c0] sm:$0xff]  ;;  %v883_v21 = vld [vmem:[#allocation2 + $0x2d0] sm:$0xff]  ;;  %v886_v44 = vld [vmem:[#allocation2 + $0x2e8] sm:$0xff] }
 0x2f1   :  { %v3180_v28 = vpack.c.bf16 %v609_v61, %v607_v23  ;;  %v3184_v29 = vpack.c.bf16 %v613_v25, %v611_v24  ;;  %v3216_v12 = vpack.c.bf16 %v876_v10, %v874_v9  ;;  %v3218_v38 = vpack.c.bf16 %v875_v14, %v873_v13  ;;  %v888_v22 = vld [vmem:[#allocation2 + $0x2f8] sm:$0xff]  ;;  %v885_v61 = vld [vmem:[#allocation2 + $0x2e0] sm:$0xff]  ;;  %v887_v24 = vld [vmem:[#allocation2 + $0x2f0] sm:$0xff] }
 0x2f2   :  { %v3220_v17 = vpack.c.bf16 %v880_v16, %v878_v15  ;;  %v3222_v58 = vpack.c.bf16 %v879_v18, %v877_v40  ;;  %v3224_v20 = vpack.c.bf16 %v884_v19, %v882_v50  ;;  %v3226_v53 = vpack.c.bf16 %v883_v21, %v881_v39  ;;  %v890_v25 = vld [vmem:[#allocation2 + $0x308] sm:$0xff]  ;;  %v912_v4 = vld [vmem:[#allocation2 + $0x3b8] sm:$0xff]  ;;  %v909_v7 = vld [vmem:[#allocation2 + $0x3a0] sm:$0xff] }
 0x2f3   :  { %3181 = vmatprep.subr.bf16.mxu1 %v3180_v28  ;;  %3329 = vmatprep.subr.bf16.mxu0 %v3180_v28  ;;  %v3228_v23 = vpack.c.bf16 %v888_v22, %v886_v44  ;;  %v910_v3 = vld [vmem:[#allocation2 + $0x3a8] sm:$0xff]  ;;  %v911_v8 = vld [vmem:[#allocation2 + $0x3b0] sm:$0xff]  ;;  %v913_v13 = vld [vmem:[#allocation2 + $0x3c0] sm:$0xff] }
 0x2f4   :  { %3183 = vmatpush1.bf16.msra.mxu1 %v3182_v27  ;;  %3331 = vmatpush1.bf16.msra.mxu0 %v3182_v27  ;;  %v3254_v9 = vpack.c.bf16 %v911_v8, %v909_v7  ;;  %v914_v10 = vld [vmem:[#allocation2 + $0x3c8] sm:$0xff]  ;;  %v915_v14 = vld [vmem:[#allocation2 + $0x3d0] sm:$0xff]  ;;  %v917_v40 = vld [vmem:[#allocation2 + $0x3e0] sm:$0xff] }
 0x2f5   :  { %3186 = vmatprep.subr.msk.bf16.mxu1 %vm4106_vm3, %v3184_v29  ;;  %3334 = vmatprep.subr.msk.bf16.mxu0 %vm4106_vm3, %v3184_v29  ;;  %v3258_v15 = vpack.c.bf16 %v915_v14, %v913_v13  ;;  %v918_v16 = vld [vmem:[#allocation2 + $0x3e8] sm:$0xff]  ;;  %v919_v18 = vld [vmem:[#allocation2 + $0x3f0] sm:$0xff]  ;;  %v733_v8 = vld [vmem:[#allocation2 + $0xd8] sm:$0xff] }
 0x2f6   :  { %v3262_v50 = vpack.c.bf16 %v919_v18, %v917_v40  ;;  %v707_v19 = vld [vmem:[#allocation2 + $0x8] sm:$0xff]  ;;  %v737_v14 = vld [vmem:[#allocation2 + $0xf8] sm:$0xff] }
 0x2f7   :  { %v731_v7 = vld [vmem:[#allocation2 + $0xc8] sm:$0xff]  ;;  %v741_v18 = vld [vmem:[#allocation2 + $0x118] sm:$0xff] }
 0x2f8   :  { %3189 = vmatpush1.bf16.msk.msra.mxu1 %vm4106_vm3, %v3187_v26  ;;  %3337 = vmatpush1.bf16.msk.msra.mxu0 %vm4106_vm3, %v3187_v26  ;;  %v735_v13 = vld [vmem:[#allocation2 + $0xe8] sm:$0xff] }
 0x2f9   :  { %3191 = vmatprep.subr.bf16.mxu1 %v3180_v28  ;;  %3403 = vmatprep.subr.bf16.mxu0 %v3180_v28  ;;  %v739_v40 = vld [vmem:[#allocation2 + $0x108] sm:$0xff] }
 0x2fb   :  { %2606 = vmatmul.mubr.msk.f32.vlgmr.msra.gmra.mrb[4].mxu1 %vm616_vm4, %v614_v31  ;;  %2618 = vmatmul.mubr.msk.f32.vlgmr.msra.gmra.mrb[12].mxu0 %vm616_vm4, %v2614_v32  ;;  %v891_v31 = vld [vmem:[#allocation2 + $0x310] sm:$0xff]  ;;  %v894_v32 = vld [vmem:[#allocation2 + $0x328] sm:$0xff] }
 0x2fc   :  { %3193 = vmatpush1.bf16.msra.mxu1 %v3182_v27  ;;  %3405 = vmatpush1.bf16.msra.mxu0 %v3182_v27  ;;  %v3230_v27 = vpack.c.bf16 %v887_v24, %v885_v61  ;;  %v711_v24 = vld [vmem:[#allocation2 + $0x28] sm:$0xff] }
 0x2fd   :  { %3196 = vmatprep.subr.msk.bf16.mxu1 %vm4106_vm3, %v3184_v29  ;;  %3408 = vmatprep.subr.msk.bf16.mxu0 %vm4106_vm3, %v3184_v29  ;;  %v889_v29 = vld [vmem:[#allocation2 + $0x300] sm:$0xff] }
 0x2fe   :  { %699 = vmatprep.mubr.f32.mxu1 %v3720_v0  ;;  %1154 = vmatprep.mubr.f32.mxu0 %v3720_v0  ;;  %v3234_v34 = vpack.c.bf16 %v891_v31, %v889_v29 }
 0x2ff   :  { %2607 = vmatmul.mubr.msk.f32.gmra.mrb[6].mxu1 %vm616_vm4, %v615_v35  ;;  %2619 = vmatmul.mubr.msk.f32.gmra.mrb[14].mxu0 %vm616_vm4, %v2615_v36  ;;  %v3236_v35 = vpack.c.bf16 %v896_v33, %v894_v32  ;;  %v893_v36 = vld [vmem:[#allocation2 + $0x320] sm:$0xff]  ;;  %v712_v33 = vld [vmem:[#allocation2 + $0x30] sm:$0xff] }
 0x300   :  { %3199 = vmatpush1.bf16.msk.msra.mxu1 %vm4106_vm3, %v3187_v26  ;;  %3411 = vmatpush1.bf16.msk.msra.mxu0 %vm4106_vm3, %v3187_v26  ;;  %v892_v26 = vld [vmem:[#allocation2 + $0x318] sm:$0xff]  ;;  %v710_v32 = vld [vmem:[#allocation2 + $0x20] sm:$0xff] }
 0x301   :  { %843 = vmatprep.mubr.f32.mxu1 %v3720_v0  ;;  %3201 = vmatprep.subr.bf16.mxu1 %v3200_v37  ;;  %v3232_v28 = vpack.c.bf16 %v892_v26, %v890_v25  ;;  %v895_v37 = vld [vmem:[#allocation2 + $0x330] sm:$0xff]  ;;  %v713_v25 = vld [vmem:[#allocation2 + $0x38] sm:$0xff] }
 0x302   :  { %1380 = vmatprep.mubr.f32.mxu0 %v3720_v0  ;;  %v3238_v43 = vpack.c.bf16 %v895_v37, %v893_v36  ;;  %v3268_v31 = vpack.c.bf16 %v713_v25, %v711_v24  ;;  %v3270_v37 = vpack.c.bf16 %v712_v33, %v710_v32  ;;  %v742_v25 = vld [vmem:[#allocation2 + $0x120] sm:$0xff] }
 0x303   :  { %2612 = vmatmul.mubr.msk.f32.vlgmr.msra.gmra.mrb[8].mxu1 %vm616_vm4, %v2608_v46  ;;  %2624 = vmatmul.mubr.msk.f32.vlgmr.msra.gmra.mrb[16].mxu0 %vm616_vm4, %v2620_v48  ;;  %v897_v46 = vld [vmem:[#allocation2 + $0x340] sm:$0xff]  ;;  %v902_v48 = vld [vmem:[#allocation2 + $0x368] sm:$0xff] }
 0x304   :  { %849 = vmatprep.mubr.f32.mxu1 %v3720_v0  ;;  %3203 = vmatpush1.bf16.msra.mxu1 %v3202_v47  ;;  %v899_v47 = vld [vmem:[#allocation2 + $0x350] sm:$0xff]  ;;  %v746_v33 = vld [vmem:[#allocation2 + $0x140] sm:$0xff] }
 0x305   :  { %3205 = vmatprep.subr.bf16.mxu1 %v3204_v49  ;;  %1386 = vmatprep.mubr.f32.mxu0 %v3720_v0  ;;  %v904_v49 = vld [vmem:[#allocation2 + $0x378] sm:$0xff]  ;;  %v3242_v51 = vpack.c.bf16 %v899_v47, %v897_v46  ;;  %v719_v46 = vld [vmem:[#allocation2 + $0x68] sm:$0xff] }
 0x306   :  { %v3244_v52 = vpack.c.bf16 %v904_v49, %v902_v48  ;;  %v721_v47 = vld [vmem:[#allocation2 + $0x78] sm:$0xff] }
 0x307   :  { %2613 = vmatmul.mubr.msk.f32.gmra.mrb[10].mxu1 %vm616_vm4, %v2609_v56  ;;  %2625 = vmatmul.mubr.msk.f32.gmra.mrb[18].mxu0 %vm616_vm4, %v2621_v59  ;;  %v906_v56 = vld [vmem:[#allocation2 + $0x388] sm:$0xff]  ;;  %v3246_v59 = vpack.c.bf16 %v903_v55, %v901_v54  ;;  %v3276_v49 = vpack.c.bf16 %v721_v47, %v719_v46  ;;  %v725_v55 = vld [vmem:[#allocation2 + $0x98] sm:$0xff] }
 0x308   :  { %3207 = vmatpush1.bf16.msra.mxu1 %v3206_v57  ;;  %v908_v57 = vld [vmem:[#allocation2 + $0x398] sm:$0xff]  ;;  %v723_v54 = vld [vmem:[#allocation2 + $0x88] sm:$0xff] }
 0x309   :  { %3209 = vmatprep.subr.bf16.mxu1 %v3208_v60  ;;  %v3248_v60 = vpack.c.bf16 %v908_v57, %v906_v56  ;;  %v3280_v57 = vpack.c.bf16 %v725_v55, %v723_v54  ;;  %v757_v46 = vld [vmem:[#allocation2 + $0x198] sm:$0xff] }
 0x30a   :  { %v761_v54 = vld [vmem:[#allocation2 + $0x1b8] sm:$0xff] }
 0x30c   :  { %3211 = vmatpush1.bf16.msra.mxu1 %v3210_v5  ;;  %v3250_v5 = vpack.c.bf16 %v907_v2, %v905_v63  ;;  %v727_v63 = vld [vmem:[#allocation2 + $0xa8] sm:$0xff]  ;;  %v729_v2 = vld [vmem:[#allocation2 + $0xb8] sm:$0xff] }
 0x30d   :  { %3213 = vmatprep.subr.bf16.mxu1 %v3212_v6  ;;  %v3252_v6 = vpack.c.bf16 %v912_v4, %v910_v3  ;;  %v3284_v4 = vpack.c.bf16 %v729_v2, %v727_v63  ;;  %v765_v63 = vld [vmem:[#allocation2 + $0x1d8] sm:$0xff] }
 0x310   :  { %3215 = vmatpush1.bf16.msra.mxu1 %v3214_v11  ;;  %v916_v11 = vld [vmem:[#allocation2 + $0x3d8] sm:$0xff] }
 0x311   :  { %3217 = vmatprep.subr.bf16.mxu1 %v3216_v12  ;;  %v3256_v12 = vpack.c.bf16 %v916_v11, %v914_v10  ;;  %v3288_v10 = vpack.c.bf16 %v733_v8, %v731_v7  ;;  %v730_v11 = vld [vmem:[#allocation2 + $0xc0] sm:$0xff]  ;;  %v769_v7 = vld [vmem:[#allocation2 + $0x1f8] sm:$0xff] }
 0x314   :  { %3219 = vmatpush1.bf16.msra.mxu1 %v3218_v38  ;;  %v920_v38 = vld [vmem:[#allocation2 + $0x3f8] sm:$0xff] }
 0x315   :  { %3221 = vmatprep.subr.bf16.mxu1 %v3220_v17  ;;  %v3260_v17 = vpack.c.bf16 %v920_v38, %v918_v16  ;;  %v3292_v16 = vpack.c.bf16 %v737_v14, %v735_v13  ;;  %v734_v38 = vld [vmem:[#allocation2 + $0xe0] sm:$0xff]  ;;  %v1163_v14 = vld [vmem:[#allocation2 + $0x408] sm:$0xff] }
 0x318   :  { %3223 = vmatpush1.bf16.msra.mxu1 %v3222_v58  ;;  %v709_v58 = vld [vmem:[#allocation2 + $0x18] sm:$0xff] }
 0x319   :  { %3225 = vmatprep.subr.bf16.mxu1 %v3224_v20  ;;  %v3264_v20 = vpack.c.bf16 %v709_v58, %v707_v19  ;;  %v3296_v19 = vpack.c.bf16 %v741_v18, %v739_v40  ;;  %v738_v58 = vld [vmem:[#allocation2 + $0x100] sm:$0xff]  ;;  %v1164_v18 = vld [vmem:[#allocation2 + $0x410] sm:$0xff] }
 0x31a   :  { %v1162_v40 = vld [vmem:[#allocation2 + $0x400] sm:$0xff] }
 0x31c   :  { %3227 = vmatpush1.bf16.msra.mxu1 %v3226_v53  ;;  %v706_v53 = vld [vmem:[#allocation2] sm:$0xff] }
 0x31d   :  { %3229 = vmatprep.subr.bf16.mxu1 %v3228_v23  ;;  %v708_v23 = vld [vmem:[#allocation2 + $0x10] sm:$0xff] }
 0x320   :  { %3231 = vmatpush1.bf16.msra.mxu1 %v3230_v27  ;;  %v3266_v27 = vpack.c.bf16 %v708_v23, %v706_v53  ;;  %v745_v53 = vld [vmem:[#allocation2 + $0x138] sm:$0xff] }
 0x321   :  { %3233 = vmatprep.subr.bf16.mxu1 %v3232_v28 }
 0x324   :  { %3235 = vmatpush1.bf16.msra.mxu1 %v3234_v34  ;;  %v715_v34 = vld [vmem:[#allocation2 + $0x48] sm:$0xff] }
 0x325   :  { %3237 = vmatprep.subr.bf16.mxu1 %v3236_v35  ;;  %v717_v35 = vld [vmem:[#allocation2 + $0x58] sm:$0xff] }
 0x326   :  { %v3272_v42 = vpack.c.bf16 %v717_v35, %v715_v34  ;;  %v748_v34 = vld [vmem:[#allocation2 + $0x150] sm:$0xff]  ;;  %v751_v35 = vld [vmem:[#allocation2 + $0x168] sm:$0xff] }
 0x328   :  { %3239 = vmatpush1.bf16.msra.mxu1 %v3238_v43  ;;  %v714_v43 = vld [vmem:[#allocation2 + $0x40] sm:$0xff] }
 0x329   :  { %3241 = vmatprep.subr.bf16.mxu1 %v3240_v45  ;;  %v716_v45 = vld [vmem:[#allocation2 + $0x50] sm:$0xff] }
 0x32a   :  { %v3274_v48 = vpack.c.bf16 %v716_v45, %v714_v43  ;;  %v752_v43 = vld [vmem:[#allocation2 + $0x170] sm:$0xff]  ;;  %v755_v45 = vld [vmem:[#allocation2 + $0x188] sm:$0xff] }
 0x32c   :  { %3243 = vmatpush1.bf16.msra.mxu1 %v3242_v51  ;;  %v718_v51 = vld [vmem:[#allocation2 + $0x60] sm:$0xff] }
 0x32d   :  { %3245 = vmatprep.subr.bf16.mxu1 %v3244_v52  ;;  %v720_v52 = vld [vmem:[#allocation2 + $0x70] sm:$0xff] }
 0x32e   :  { %v3278_v56 = vpack.c.bf16 %v720_v52, %v718_v51  ;;  %v756_v51 = vld [vmem:[#allocation2 + $0x190] sm:$0xff]  ;;  %v759_v52 = vld [vmem:[#allocation2 + $0x1a8] sm:$0xff] }
 0x330   :  { %3247 = vmatpush1.bf16.msra.mxu1 %v3246_v59  ;;  %v722_v59 = vld [vmem:[#allocation2 + $0x80] sm:$0xff] }
 0x331   :  { %3249 = vmatprep.subr.bf16.mxu1 %v3248_v60  ;;  %v724_v60 = vld [vmem:[#allocation2 + $0x90] sm:$0xff] }
 0x332   :  { %v3282_v3 = vpack.c.bf16 %v724_v60, %v722_v59  ;;  %v760_v59 = vld [vmem:[#allocation2 + $0x1b0] sm:$0xff]  ;;  %v763_v60 = vld [vmem:[#allocation2 + $0x1c8] sm:$0xff] }
 0x334   :  { %3251 = vmatpush1.bf16.msra.mxu1 %v3250_v5  ;;  %v726_v5 = vld [vmem:[#allocation2 + $0xa0] sm:$0xff] }
 0x335   :  { %3253 = vmatprep.subr.bf16.mxu1 %v3252_v6  ;;  %v728_v6 = vld [vmem:[#allocation2 + $0xb0] sm:$0xff] }
 0x338   :  { %3255 = vmatpush1.bf16.msra.mxu1 %v3254_v9  ;;  %v3286_v9 = vpack.c.bf16 %v728_v6, %v726_v5  ;;  %v764_v5 = vld [vmem:[#allocation2 + $0x1d0] sm:$0xff]  ;;  %v767_v6 = vld [vmem:[#allocation2 + $0x1e8] sm:$0xff] }
 0x339   :  { %3257 = vmatprep.subr.bf16.mxu1 %v3256_v12  ;;  %v732_v12 = vld [vmem:[#allocation2 + $0xd0] sm:$0xff] }
 0x33c   :  { %3259 = vmatpush1.bf16.msra.mxu1 %v3258_v15  ;;  %v3290_v15 = vpack.c.bf16 %v732_v12, %v730_v11  ;;  %v766_v11 = vld [vmem:[#allocation2 + $0x1e0] sm:$0xff]  ;;  %v768_v12 = vld [vmem:[#allocation2 + $0x1f0] sm:$0xff] }
 0x33d   :  { %3261 = vmatprep.subr.bf16.mxu1 %v3260_v17  ;;  %v736_v17 = vld [vmem:[#allocation2 + $0xf0] sm:$0xff] }
 0x340   :  { %3263 = vmatpush1.bf16.msra.mxu1 %v3262_v50  ;;  %v3294_v50 = vpack.c.bf16 %v736_v17, %v734_v38 }
 0x341   :  { %3265 = vmatprep.subr.bf16.mxu1 %v3264_v20  ;;  %v740_v20 = vld [vmem:[#allocation2 + $0x110] sm:$0xff] }
 0x342   :  { %v3298_v23 = vpack.c.bf16 %v740_v20, %v738_v58  ;;  %v1169_v58 = vld [vmem:[#allocation2 + $0x438] sm:$0xff]  ;;  %v3340_v20 = vpack.c.bf16 %v1164_v18, %v1162_v40  ;;  %v1186_v18 = vld [vmem:[#allocation2 + $0x4c0] sm:$0xff] }
 0x3ce   :  { %v4164_v39 = vpop.f32.mrb[4].mxu1  ;;  %v4170_v61 = vpop.f32.mrb[12].mxu0 }
 0x3cf   :  { %v697_v21 = vpop.f32.mrb[5].mxu1  ;;  %v4172_v28 = vpop.f32.mrb[13].mxu0 }
 0x3d2   :  { %v4166_v44 = vpop.f32.mrb[6].mxu1 }
 0x3d3   :  { %v4168_v22 = vpop.f32.mrb[7].mxu1 }
 0x3d6   :  { %v845_v26 = vpop.f32.mrb[8].mxu1 }
 0x3d7   :  { %v847_v29 = vpop.f32.mrb[9].mxu1 }
 0x3d8   :  { %985 = vmatprep.mubr.f32.mxu1 %v847_v29  ;;  %v749_v29 = vld [vmem:[#allocation2 + $0x158] sm:$0xff] }
 0x3d9   :  { %986 = vmatmul.mubr.f32.vlgmr.msra.gmra.mrb[12].mxu1 %v845_v26  ;;  %v744_v26 = vld [vmem:[#allocation2 + $0x130] sm:$0xff] }
 0x3da   :  { %3267 = vmatpush1.bf16.msra.mxu1 %v3266_v27  ;;  %v851_v36 = vpop.f32.mrb[10].mxu1  ;;  %v747_v27 = vld [vmem:[#allocation2 + $0x148] sm:$0xff] }
 0x3db   :  { %v853_v41 = vpop.f32.mrb[11].mxu1  ;;  %3269 = vmatprep.subr.bf16.mxu1 %v3268_v31  ;;  %v3302_v31 = vpack.c.bf16 %v744_v26, %v742_v25  ;;  %v3304_v32 = vpack.c.bf16 %v749_v29, %v747_v27  ;;  %v1171_v25 = vld [vmem:[#allocation2 + $0x448] sm:$0xff]  ;;  %v1173_v26 = vld [vmem:[#allocation2 + $0x458] sm:$0xff] }
 0x3dc   :  { %991 = vmatprep.mubr.f32.mxu1 %v853_v41 }
 0x3dd   :  { %992 = vmatmul.mubr.f32.gmra.mrb[14].mxu1 %v851_v36  ;;  %v753_v36 = vld [vmem:[#allocation2 + $0x178] sm:$0xff] }
 0x3de   :  { %3271 = vmatpush1.bf16.msra.mxu1 %v3270_v37  ;;  %1062 = vmatprep.mubr.f32.mxu1 %v697_v21  ;;  %v743_v21 = vld [vmem:[#allocation2 + $0x128] sm:$0xff]  ;;  %v3306_v37 = vpack.c.bf16 %v748_v34, %v746_v33  ;;  %v3308_v41 = vpack.c.bf16 %v753_v36, %v751_v35  ;;  %v1172_v33 = vld [vmem:[#allocation2 + $0x450] sm:$0xff]  ;;  %v1177_v35 = vld [vmem:[#allocation2 + $0x478] sm:$0xff] }
 0x3df   :  { %3273 = vmatprep.subr.bf16.mxu1 %v3272_v42  ;;  %v3300_v24 = vpack.c.bf16 %v745_v53, %v743_v21  ;;  %v750_v42 = vld [vmem:[#allocation2 + $0x160] sm:$0xff]  ;;  %v1175_v34 = vld [vmem:[#allocation2 + $0x468] sm:$0xff] }
 0x3e0   :  { %v3310_v47 = vpack.c.bf16 %v752_v43, %v750_v42  ;;  %v1174_v36 = vld [vmem:[#allocation2 + $0x460] sm:$0xff] }
 0x3e2   :  { %3275 = vmatpush1.bf16.msra.mxu1 %v3274_v48  ;;  %v3312_v48 = vpack.c.bf16 %v757_v46, %v755_v45  ;;  %v1573_v45 = vld [vmem:[%s4691_s11 + $0x90] sm:$0xff]  ;;  %v1574_v46 = vld [vmem:[%s4691_s11 + $0x98] sm:$0xff] }
 0x3e3   :  { %3277 = vmatprep.subr.bf16.mxu1 %v3276_v49  ;;  %v754_v49 = vld [vmem:[#allocation2 + $0x180] sm:$0xff] }
 0x3e4   :  { %v3314_v55 = vpack.c.bf16 %v756_v51, %v754_v49  ;;  %v4212_v49 = vpack.c.bf16 %v1574_v46, %v1573_v45  ;;  %v1558_v51 = vld [vmem:[%s4691_s11 + $0x18] sm:$0xff] }
 0x3e6   :  { %3279 = vmatpush1.bf16.msra.mxu1 %v3278_v56  ;;  %v3316_v56 = vpack.c.bf16 %v761_v54, %v759_v52  ;;  %v1575_v52 = vld [vmem:[%s4691_s11 + $0xa0] sm:$0xff]  ;;  %v1179_v54 = vld [vmem:[#allocation2 + $0x488] sm:$0xff] }
 0x3e7   :  { %3281 = vmatprep.subr.bf16.mxu1 %v3280_v57  ;;  %v758_v57 = vld [vmem:[#allocation2 + $0x1a0] sm:$0xff] }
 0x3e8   :  { %v3318_v2 = vpack.c.bf16 %v760_v59, %v758_v57 }
 0x3ea   :  { %3283 = vmatpush1.bf16.msra.mxu1 %v3282_v3  ;;  %v3320_v3 = vpack.c.bf16 %v765_v63, %v763_v60  ;;  %v1559_v63 = vld [vmem:[%s4691_s11 + $0x20] sm:$0xff] }
 0x3eb   :  { %3285 = vmatprep.subr.bf16.mxu1 %v3284_v4  ;;  %v762_v4 = vld [vmem:[#allocation2 + $0x1c0] sm:$0xff] }
 0x3ec   :  { %v3322_v8 = vpack.c.bf16 %v764_v5, %v762_v4  ;;  %v1178_v4 = vld [vmem:[#allocation2 + $0x480] sm:$0xff]  ;;  %v1180_v5 = vld [vmem:[#allocation2 + $0x490] sm:$0xff] }
 0x3ee   :  { %3287 = vmatpush1.bf16.msra.mxu1 %v3286_v9  ;;  %v4174_v9 = vpop.f32.mrb[14].mxu0 }
 0x3ef   :  { %3289 = vmatprep.subr.bf16.mxu1 %v3288_v10  ;;  %v3324_v10 = vpack.c.bf16 %v769_v7, %v767_v6  ;;  %v4176_v13 = vpop.f32.mrb[15].mxu0  ;;  %v1183_v6 = vld [vmem:[#allocation2 + $0x4a8] sm:$0xff]  ;;  %v1185_v7 = vld [vmem:[#allocation2 + $0x4b8] sm:$0xff] }
 0x3f0   :  { %v4178_v38 = vpop.f32.mrb[16].mxu0 }
 0x3f2   :  { %3291 = vmatpush1.bf16.msra.mxu1 %v3290_v15  ;;  %v1165_v15 = vld [vmem:[#allocation2 + $0x418] sm:$0xff] }
 0x3f3   :  { %3293 = vmatprep.subr.bf16.mxu1 %v3292_v16  ;;  %v3326_v16 = vpack.c.bf16 %v768_v12, %v766_v11  ;;  %v3338_v17 = vpack.c.bf16 %v1165_v15, %v1163_v14  ;;  %v3358_v11 = vpack.c.bf16 %v1185_v7, %v1183_v6  ;;  %v1182_v12 = vld [vmem:[#allocation2 + $0x4a0] sm:$0xff]  ;;  %v1184_v14 = vld [vmem:[#allocation2 + $0x4b0] sm:$0xff]  ;;  %v1187_v15 = vld [vmem:[#allocation2 + $0x4c8] sm:$0xff] }
 0x3f4   :  { %v1212_v6 = vld [vmem:[#allocation2 + $0x590] sm:$0xff]  ;;  %v1215_v7 = vld [vmem:[#allocation2 + $0x5a8] sm:$0xff] }
 0x3f6   :  { %3295 = vmatpush1.bf16.msra.mxu1 %v3294_v50  ;;  %v4180_v50 = vpop.f32.mrb[17].mxu0 }
 0x3f7   :  { %3297 = vmatprep.subr.bf16.mxu1 %v3296_v19  ;;  %v1167_v19 = vld [vmem:[#allocation2 + $0x428] sm:$0xff]  ;;  %v4182_v21 = vpop.f32.mrb[18].mxu0 }
 0x3f8   :  { %v3342_v53 = vpack.c.bf16 %v1169_v58, %v1167_v19  ;;  %v4185_v27 = vpop.f32.mrb[19].mxu0  ;;  %v1188_v19 = vld [vmem:[#allocation2 + $0x4d0] sm:$0xff]  ;;  %v1191_v58 = vld [vmem:[#allocation2 + $0x4e8] sm:$0xff] }
 0x3fa   :  { %3299 = vmatpush1.bf16.msra.mxu1 %v3298_v23  ;;  %v1166_v23 = vld [vmem:[#allocation2 + $0x420] sm:$0xff] }
 0x3fb   :  { %3301 = vmatprep.subr.bf16.mxu1 %v3300_v24  ;;  %v1168_v24 = vld [vmem:[#allocation2 + $0x430] sm:$0xff] }
 0x3fc   :  { %v3344_v29 = vpack.c.bf16 %v1168_v24, %v1166_v23  ;;  %v1190_v24 = vld [vmem:[#allocation2 + $0x4e0] sm:$0xff] }
 0x3fe   :  { %3303 = vmatpush1.bf16.msra.mxu1 %v3302_v31  ;;  %v3346_v31 = vpack.c.bf16 %v1173_v26, %v1171_v25  ;;  %v1192_v25 = vld [vmem:[#allocation2 + $0x4f0] sm:$0xff]  ;;  %v1195_v26 = vld [vmem:[#allocation2 + $0x508] sm:$0xff] }
 0x3ff   :  { %3305 = vmatprep.subr.bf16.mxu1 %v3304_v32  ;;  %v1170_v32 = vld [vmem:[#allocation2 + $0x440] sm:$0xff] }
 0x400   :  { %v3348_v42 = vpack.c.bf16 %v1172_v33, %v1170_v32  ;;  %v1194_v33 = vld [vmem:[#allocation2 + $0x500] sm:$0xff] }
 0x402   :  { %3307 = vmatpush1.bf16.msra.mxu1 %v3306_v37  ;;  %v1176_v37 = vld [vmem:[#allocation2 + $0x470] sm:$0xff] }
 0x403   :  { %3309 = vmatprep.subr.bf16.mxu1 %v3308_v41  ;;  %v1555_v41 = vld [vmem:[%s4691_s11] sm:$0xff]  ;;  %v3352_v59 = vpack.c.bf16 %v1176_v37, %v1174_v36  ;;  %v1201_v36 = vld [vmem:[#allocation2 + $0x538] sm:$0xff] }
 0x406   :  { %3311 = vmatpush1.bf16.msra.mxu1 %v3310_v47  ;;  %v3350_v47 = vpack.c.bf16 %v1177_v35, %v1175_v34  ;;  %v1196_v34 = vld [vmem:[#allocation2 + $0x510] sm:$0xff]  ;;  %v1199_v35 = vld [vmem:[#allocation2 + $0x528] sm:$0xff] }
 0x407   :  { %3313 = vmatprep.subr.bf16.mxu1 %v3312_v48  ;;  %v3372_v37 = vpack.c.bf16 %v1196_v34, %v1194_v33  ;;  %v1394_v34 = vld [vmem:[#allocation2 + $0x600] sm:$0xff] }
 0x40a   :  { %3315 = vmatpush1.bf16.msra.mxu1 %v3314_v55  ;;  %v1181_v55 = vld [vmem:[#allocation2 + $0x498] sm:$0xff] }
 0x40b   :  { %3317 = vmatprep.subr.bf16.mxu1 %v3316_v56  ;;  %v1576_v56 = vld [vmem:[%s4691_s11 + $0xa8] sm:$0xff] }
 0x40c   :  { %v4231_v60 = vpack.c.bf16 %v1576_v56, %v1575_v52  ;;  %v1209_v52 = vld [vmem:[#allocation2 + $0x578] sm:$0xff]  ;;  %v1206_v56 = vld [vmem:[#allocation2 + $0x560] sm:$0xff] }
 0x40e   :  { %3319 = vmatpush1.bf16.msra.mxu1 %v3318_v2  ;;  %v1560_v2 = vld [vmem:[%s4691_s11 + $0x28] sm:$0xff] }
 0x40f   :  { %3321 = vmatprep.subr.bf16.mxu1 %v3320_v3  ;;  %v3354_v3 = vpack.c.bf16 %v1181_v55, %v1179_v54 }
 0x412   :  { %3323 = vmatpush1.bf16.msra.mxu1 %v3322_v8  ;;  %v4240_v8 = vpack.c.bf16 %v1560_v2, %v1559_v63  ;;  %v1211_v63 = vld [vmem:[#allocation2 + $0x588] sm:$0xff]  ;;  %v1213_v2 = vld [vmem:[#allocation2 + $0x598] sm:$0xff] }
 0x413   :  { %3325 = vmatprep.subr.bf16.mxu1 %v3324_v10  ;;  %v3356_v10 = vpack.c.bf16 %v1180_v5, %v1178_v4  ;;  %v3386_v4 = vpack.c.bf16 %v1213_v2, %v1211_v63  ;;  %v1210_v5 = vld [vmem:[#allocation2 + $0x580] sm:$0xff]  ;;  %v1411_v63 = vld [vmem:[#allocation2 + $0x688] sm:$0xff]  ;;  %v1413_v2 = vld [vmem:[#allocation2 + $0x698] sm:$0xff] }
 0x416   :  { %3327 = vmatpush1.bf16.msra.mxu1 %v3326_v16  ;;  %v1189_v16 = vld [vmem:[#allocation2 + $0x4d8] sm:$0xff] }
 0x417   :  { %3339 = vmatprep.subr.bf16.mxu1 %v3338_v17  ;;  %v3360_v17 = vpack.c.bf16 %v1184_v14, %v1182_v12  ;;  %v3362_v40 = vpack.c.bf16 %v1189_v16, %v1187_v15  ;;  %v1214_v14 = vld [vmem:[#allocation2 + $0x5a0] sm:$0xff]  ;;  %v1216_v15 = vld [vmem:[#allocation2 + $0x5b0] sm:$0xff]  ;;  %v1219_v16 = vld [vmem:[#allocation2 + $0x5c8] sm:$0xff] }
 0x419   :  { %1063 = vmatmul.mubr.f32.vlgmr.msra.gmra.mrb[12].mxu1 %v4164_v39  ;;  %v1571_v39 = vld [vmem:[%s4691_s11 + $0x80] sm:$0xff] }
 0x41a   :  { %1068 = vmatprep.mubr.f32.mxu1 %v4168_v22  ;;  %3341 = vmatpush1.bf16.msra.mxu1 %v3340_v20  ;;  %v1572_v22 = vld [vmem:[%s4691_s11 + $0x88] sm:$0xff]  ;;  %v1193_v20 = vld [vmem:[#allocation2 + $0x4f8] sm:$0xff] }
 0x41b   :  { %3343 = vmatprep.subr.bf16.mxu1 %v3342_v53  ;;  %v4199_v43 = vpack.c.bf16 %v1572_v22, %v1571_v39  ;;  %v3364_v53 = vpack.c.bf16 %v1188_v19, %v1186_v18  ;;  %v3366_v23 = vpack.c.bf16 %v1193_v20, %v1191_v58  ;;  %v3374_v39 = vpack.c.bf16 %v1201_v36, %v1199_v35  ;;  %v1198_v22 = vld [vmem:[#allocation2 + $0x520] sm:$0xff]  ;;  %v1220_v58 = vld [vmem:[#allocation2 + $0x5d0] sm:$0xff]  ;;  %v1223_v20 = vld [vmem:[#allocation2 + $0x5e8] sm:$0xff] }
 0x41c   :  { %v1218_v19 = vld [vmem:[#allocation2 + $0x5c0] sm:$0xff]  ;;  %v1396_v35 = vld [vmem:[#allocation2 + $0x610] sm:$0xff]  ;;  %v1399_v36 = vld [vmem:[#allocation2 + $0x628] sm:$0xff] }
 0x41d   :  { %1069 = vmatmul.mubr.f32.gmra.mrb[14].mxu1 %v4166_v44  ;;  %v1556_v44 = vld [vmem:[%s4691_s11 + $0x8] sm:$0xff]  ;;  %3477 = vmatprep.subr.bf16.mxu0 %v4199_v43 }
 0x41e   :  { %3345 = vmatpush1.bf16.msra.mxu1 %v3344_v29  ;;  %1290 = vmatprep.mubr.f32.mxu1 %v4172_v28  ;;  %v4210_v48 = vpack.c.bf16 %v1556_v44, %v1555_v41  ;;  %v1557_v28 = vld [vmem:[%s4691_s11 + $0x10] sm:$0xff]  ;;  %v1197_v29 = vld [vmem:[#allocation2 + $0x518] sm:$0xff] }
 0x41f   :  { %3347 = vmatprep.subr.bf16.mxu1 %v3346_v31  ;;  %v4228_v57 = vpack.c.bf16 %v1558_v51, %v1557_v28  ;;  %v3368_v31 = vpack.c.bf16 %v1192_v25, %v1190_v24  ;;  %v3370_v32 = vpack.c.bf16 %v1197_v29, %v1195_v26  ;;  %v1200_v41 = vld [vmem:[#allocation2 + $0x530] sm:$0xff]  ;;  %v1205_v44 = vld [vmem:[#allocation2 + $0x558] sm:$0xff]  ;;  %v1207_v51 = vld [vmem:[#allocation2 + $0x568] sm:$0xff] }
 0x420   :  { %3479 = vmatpush3.bf16.msra.mxu0 %v4210_v48  ;;  %v3376_v45 = vpack.c.bf16 %v1200_v41, %v1198_v22  ;;  %v1204_v28 = vld [vmem:[#allocation2 + $0x550] sm:$0xff]  ;;  %v3382_v55 = vpack.c.bf16 %v1209_v52, %v1207_v51  ;;  %v1222_v25 = vld [vmem:[#allocation2 + $0x5e0] sm:$0xff]  ;;  %v1395_v29 = vld [vmem:[#allocation2 + $0x608] sm:$0xff] }
 0x421   :  { %3481 = vmatprep.subr.bf16.mxu0 %v4212_v49  ;;  %v1224_v26 = vld [vmem:[#allocation2 + $0x5f0] sm:$0xff]  ;;  %v1398_v41 = vld [vmem:[#allocation2 + $0x620] sm:$0xff]  ;;  %v1407_v52 = vld [vmem:[#allocation2 + $0x668] sm:$0xff] }
 0x422   :  { %3349 = vmatpush1.bf16.msra.mxu1 %v3348_v42  ;;  %v1203_v42 = vld [vmem:[#allocation2 + $0x548] sm:$0xff]  ;;  %v1404_v51 = vld [vmem:[#allocation2 + $0x650] sm:$0xff] }
 0x423   :  { %3351 = vmatprep.subr.bf16.mxu1 %v3350_v47  ;;  %v3378_v46 = vpack.c.bf16 %v1205_v44, %v1203_v42  ;;  %v1202_v47 = vld [vmem:[#allocation2 + $0x540] sm:$0xff]  ;;  %v1400_v42 = vld [vmem:[#allocation2 + $0x630] sm:$0xff]  ;;  %v1403_v44 = vld [vmem:[#allocation2 + $0x648] sm:$0xff] }
 0x424   :  { %3483 = vmatpush3.bf16.msra.mxu0 %v4228_v57  ;;  %v3380_v54 = vpack.c.bf16 %v1204_v28, %v1202_v47  ;;  %v1402_v28 = vld [vmem:[#allocation2 + $0x640] sm:$0xff] }
 0x425   :  { %3485 = vmatprep.subr.bf16.mxu0 %v4231_v60 }
 0x426   :  { %3353 = vmatpush1.bf16.msra.mxu1 %v3352_v59  ;;  %v1208_v59 = vld [vmem:[#allocation2 + $0x570] sm:$0xff] }
 0x427   :  { %3355 = vmatprep.subr.bf16.mxu1 %v3354_v3  ;;  %v3384_v3 = vpack.c.bf16 %v1208_v59, %v1206_v56  ;;  %v1406_v59 = vld [vmem:[#allocation2 + $0x660] sm:$0xff] }
 0x428   :  { %3487 = vmatpush3.bf16.msra.mxu0 %v4240_v8 }
 0x42a   :  { %3357 = vmatpush1.bf16.msra.mxu1 %v3356_v10  ;;  %v1217_v10 = vld [vmem:[#allocation2 + $0x5b8] sm:$0xff] }
 0x42b   :  { %3359 = vmatprep.subr.bf16.mxu1 %v3358_v11  ;;  %v3388_v11 = vpack.c.bf16 %v1212_v6, %v1210_v5  ;;  %v3390_v12 = vpack.c.bf16 %v1217_v10, %v1215_v7  ;;  %v1412_v5 = vld [vmem:[#allocation2 + $0x690] sm:$0xff]  ;;  %v1415_v6 = vld [vmem:[#allocation2 + $0x6a8] sm:$0xff]  ;;  %v1417_v7 = vld [vmem:[#allocation2 + $0x6b8] sm:$0xff] }
 0x42c   :  { %v3432_v10 = vpack.c.bf16 %v1417_v7, %v1415_v6  ;;  %v1446_v7 = vld [vmem:[#allocation2 + $0x7a0] sm:$0xff] }
 0x42e   :  { %3361 = vmatpush1.bf16.msra.mxu1 %v3360_v17  ;;  %v1221_v17 = vld [vmem:[#allocation2 + $0x5d8] sm:$0xff] }
 0x42f   :  { %3363 = vmatprep.subr.bf16.mxu1 %v3362_v40  ;;  %v3392_v40 = vpack.c.bf16 %v1216_v15, %v1214_v14  ;;  %v3394_v18 = vpack.c.bf16 %v1221_v17, %v1219_v16  ;;  %v1421_v14 = vld [vmem:[#allocation2 + $0x6d8] sm:$0xff]  ;;  %v1418_v17 = vld [vmem:[#allocation2 + $0x6c0] sm:$0xff] }
 0x432   :  { %3365 = vmatpush1.bf16.msra.mxu1 %v3364_v53  ;;  %v1225_v53 = vld [vmem:[#allocation2 + $0x5f8] sm:$0xff] }
 0x433   :  { %3367 = vmatprep.subr.bf16.mxu1 %v3366_v23  ;;  %v3396_v23 = vpack.c.bf16 %v1220_v58, %v1218_v19  ;;  %v3398_v24 = vpack.c.bf16 %v1225_v53, %v1223_v20  ;;  %v1425_v19 = vld [vmem:[#allocation2 + $0x6f8] sm:$0xff]  ;;  %v1422_v53 = vld [vmem:[#allocation2 + $0x6e0] sm:$0xff] }
 0x436   :  { %3369 = vmatpush1.bf16.msra.mxu1 %v3368_v31  ;;  %v1397_v31 = vld [vmem:[#allocation2 + $0x618] sm:$0xff] }
 0x437   :  { %3371 = vmatprep.subr.bf16.mxu1 %v3370_v32  ;;  %v3400_v32 = vpack.c.bf16 %v1224_v26, %v1222_v25  ;;  %v3412_v33 = vpack.c.bf16 %v1397_v31, %v1395_v29  ;;  %v1429_v25 = vld [vmem:[#allocation2 + $0x718] sm:$0xff]  ;;  %v1426_v31 = vld [vmem:[#allocation2 + $0x700] sm:$0xff] }
 0x43a   :  { %3373 = vmatpush1.bf16.msra.mxu1 %v3372_v37  ;;  %v1401_v37 = vld [vmem:[#allocation2 + $0x638] sm:$0xff] }
 0x43b   :  { %3375 = vmatprep.subr.bf16.mxu1 %v3374_v39  ;;  %v3414_v39 = vpack.c.bf16 %v1396_v35, %v1394_v34  ;;  %v3416_v22 = vpack.c.bf16 %v1401_v37, %v1399_v36  ;;  %v1433_v34 = vld [vmem:[#allocation2 + $0x738] sm:$0xff]  ;;  %v1430_v37 = vld [vmem:[#allocation2 + $0x720] sm:$0xff] }
 0x43e   :  { %3377 = vmatpush1.bf16.msra.mxu1 %v3376_v45  ;;  %v1405_v45 = vld [vmem:[#allocation2 + $0x658] sm:$0xff] }
 0x43f   :  { %3379 = vmatprep.subr.bf16.mxu1 %v3378_v46  ;;  %v3418_v46 = vpack.c.bf16 %v1400_v42, %v1398_v41  ;;  %v3420_v47 = vpack.c.bf16 %v1405_v45, %v1403_v44  ;;  %v1437_v41 = vld [vmem:[#allocation2 + $0x758] sm:$0xff]  ;;  %v1434_v45 = vld [vmem:[#allocation2 + $0x740] sm:$0xff] }
 0x442   :  { %3381 = vmatpush1.bf16.msra.mxu1 %v3380_v54  ;;  %v1409_v54 = vld [vmem:[#allocation2 + $0x678] sm:$0xff] }
 0x443   :  { %3383 = vmatprep.subr.bf16.mxu1 %v3382_v55  ;;  %v3422_v55 = vpack.c.bf16 %v1404_v51, %v1402_v28  ;;  %v3424_v56 = vpack.c.bf16 %v1409_v54, %v1407_v52  ;;  %v1441_v28 = vld [vmem:[#allocation2 + $0x778] sm:$0xff]  ;;  %v1438_v54 = vld [vmem:[#allocation2 + $0x760] sm:$0xff] }
 0x446   :  { %3385 = vmatpush1.bf16.msra.mxu1 %v3384_v3  ;;  %v3428_v3 = vpack.c.bf16 %v1413_v2, %v1411_v63  ;;  %v1442_v2 = vld [vmem:[#allocation2 + $0x780] sm:$0xff] }
 0x447   :  { %3387 = vmatprep.subr.bf16.mxu1 %v3386_v4  ;;  %v1410_v4 = vld [vmem:[#allocation2 + $0x680] sm:$0xff] }
 0x44a   :  { %3389 = vmatpush1.bf16.msra.mxu1 %v3388_v11  ;;  %v1414_v11 = vld [vmem:[#allocation2 + $0x6a0] sm:$0xff] }
 0x44b   :  { %3391 = vmatprep.subr.bf16.mxu1 %v3390_v12  ;;  %v1419_v12 = vld [vmem:[#allocation2 + $0x6c8] sm:$0xff] }
 0x44c   :  { %v3436_v16 = vpack.c.bf16 %v1421_v14, %v1419_v12  ;;  %v1450_v14 = vld [vmem:[#allocation2 + $0x7c0] sm:$0xff] }
 0x44e   :  { %3393 = vmatpush1.bf16.msra.mxu1 %v3392_v40  ;;  %v1420_v40 = vld [vmem:[#allocation2 + $0x6d0] sm:$0xff] }
 0x44f   :  { %3395 = vmatprep.subr.bf16.mxu1 %v3394_v18  ;;  %v1423_v18 = vld [vmem:[#allocation2 + $0x6e8] sm:$0xff]  ;;  %v3438_v58 = vpack.c.bf16 %v1420_v40, %v1418_v17  ;;  %v1457_v17 = vld [vmem:[#allocation2 + $0x7f8] sm:$0xff] }
 0x450   :  { %v3440_v20 = vpack.c.bf16 %v1425_v19, %v1423_v18  ;;  %v1454_v19 = vld [vmem:[#allocation2 + $0x7e0] sm:$0xff] }
 0x452   :  { %3397 = vmatpush1.bf16.msra.mxu1 %v3396_v23  ;;  %v1424_v23 = vld [vmem:[#allocation2 + $0x6f0] sm:$0xff] }
 0x453   :  { %3399 = vmatprep.subr.bf16.mxu1 %v3398_v24  ;;  %v1427_v24 = vld [vmem:[#allocation2 + $0x708] sm:$0xff]  ;;  %v3442_v26 = vpack.c.bf16 %v1424_v23, %v1422_v53  ;;  %v1577_v53 = vld [vmem:[%s4691_s11 + $0xb0] sm:$0xff]  ;;  %v1578_v23 = vld [vmem:[%s4691_s11 + $0xb8] sm:$0xff] }
 0x454   :  { %v3444_v29 = vpack.c.bf16 %v1429_v25, %v1427_v24  ;;  %v4257_v24 = vpack.c.bf16 %v1578_v23, %v1577_v53  ;;  %v1561_v25 = vld [vmem:[%s4691_s11 + $0x30] sm:$0xff] }
 0x456   :  { %3401 = vmatpush1.bf16.msra.mxu1 %v3400_v32  ;;  %v1428_v32 = vld [vmem:[#allocation2 + $0x710] sm:$0xff]  ;;  %3489 = vmatprep.subr.bf16.mxu0 %v4257_v24 }
 0x457   :  { %3413 = vmatprep.subr.bf16.mxu1 %v3412_v33  ;;  %v1431_v33 = vld [vmem:[#allocation2 + $0x728] sm:$0xff]  ;;  %v3446_v35 = vpack.c.bf16 %v1428_v32, %v1426_v31  ;;  %v1563_v31 = vld [vmem:[%s4691_s11 + $0x40] sm:$0xff] }
 0x458   :  { %v3448_v36 = vpack.c.bf16 %v1433_v34, %v1431_v33  ;;  %v1564_v32 = vld [vmem:[%s4691_s11 + $0x48] sm:$0xff]  ;;  %v1581_v34 = vld [vmem:[%s4691_s11 + $0xd0] sm:$0xff] }
 0x459   :  { %1291 = vmatmul.mubr.f32.vlgmr.msra.gmra.mrb[12].mxu1 %v4170_v61  ;;  %v1408_v61 = vld [vmem:[#allocation2 + $0x670] sm:$0xff]  ;;  %v4283_v33 = vpack.c.bf16 %v1564_v32, %v1563_v31 }
 0x45a   :  { %3415 = vmatpush1.bf16.msra.mxu1 %v3414_v39  ;;  %1296 = vmatprep.mubr.f32.mxu1 %v4176_v13  ;;  %v3426_v13 = vpack.c.bf16 %v1408_v61, %v1406_v59  ;;  %v1432_v39 = vld [vmem:[#allocation2 + $0x730] sm:$0xff]  ;;  %v1445_v59 = vld [vmem:[#allocation2 + $0x798] sm:$0xff] }
 0x45b   :  { %3417 = vmatprep.subr.bf16.mxu1 %v3416_v22  ;;  %v1435_v22 = vld [vmem:[#allocation2 + $0x748] sm:$0xff]  ;;  %v3450_v42 = vpack.c.bf16 %v1432_v39, %v1430_v37  ;;  %v1565_v37 = vld [vmem:[%s4691_s11 + $0x50] sm:$0xff]  ;;  %v1566_v39 = vld [vmem:[%s4691_s11 + $0x58] sm:$0xff] }
 0x45c   :  { %v3452_v44 = vpack.c.bf16 %v1437_v41, %v1435_v22  ;;  %v4301_v22 = vpack.c.bf16 %v1566_v39, %v1565_v37  ;;  %v1583_v41 = vld [vmem:[%s4691_s11 + $0xe0] sm:$0xff]  ;;  %v1765_v39 = vld [vmem:[%s4690_s10 + $0x38] sm:$0xff] }
 0x45d   :  { %1297 = vmatmul.mubr.f32.gmra.mrb[14].mxu1 %v4174_v9  ;;  %v3430_v9 = vpack.c.bf16 %v1412_v5, %v1410_v4  ;;  %v1449_v4 = vld [vmem:[#allocation2 + $0x7b8] sm:$0xff] }
 0x45e   :  { %3419 = vmatpush1.bf16.msra.mxu1 %v3418_v46  ;;  %1522 = vmatprep.mubr.f32.mxu1 %v4180_v50  ;;  %v1416_v50 = vld [vmem:[#allocation2 + $0x6b0] sm:$0xff] }
 0x45f   :  { %3421 = vmatprep.subr.bf16.mxu1 %v3420_v47  ;;  %v3434_v15 = vpack.c.bf16 %v1416_v50, %v1414_v11  ;;  %v1436_v46 = vld [vmem:[#allocation2 + $0x750] sm:$0xff]  ;;  %v1439_v47 = vld [vmem:[#allocation2 + $0x768] sm:$0xff]  ;;  %v1453_v11 = vld [vmem:[#allocation2 + $0x7d8] sm:$0xff] }
 0x460   :  { %v3454_v51 = vpack.c.bf16 %v1436_v46, %v1434_v45  ;;  %v3456_v52 = vpack.c.bf16 %v1441_v28, %v1439_v47  ;;  %v1567_v45 = vld [vmem:[%s4691_s11 + $0x60] sm:$0xff]  ;;  %v1568_v46 = vld [vmem:[%s4691_s11 + $0x68] sm:$0xff]  ;;  %v1585_v28 = vld [vmem:[%s4691_s11 + $0xf0] sm:$0xff] }
 0x461   :  { %v4319_v47 = vpack.c.bf16 %v1568_v46, %v1567_v45 }
 0x462   :  { %3423 = vmatpush1.bf16.msra.mxu1 %v3422_v55  ;;  %v1440_v55 = vld [vmem:[#allocation2 + $0x770] sm:$0xff] }
 0x463   :  { %3425 = vmatprep.subr.bf16.mxu1 %v3424_v56  ;;  %v1443_v56 = vld [vmem:[#allocation2 + $0x788] sm:$0xff]  ;;  %v3458_v61 = vpack.c.bf16 %v1440_v55, %v1438_v54  ;;  %v1569_v54 = vld [vmem:[%s4691_s11 + $0x70] sm:$0xff]  ;;  %v1570_v55 = vld [vmem:[%s4691_s11 + $0x78] sm:$0xff] }
 0x464   :  { %v3460_v63 = vpack.c.bf16 %v1445_v59, %v1443_v56  ;;  %v3506_v56 = vpack.c.bf16 %v1570_v55, %v1569_v54 }
 0x466   :  { %3427 = vmatpush1.bf16.msra.mxu1 %v3426_v13  ;;  %v1444_v13 = vld [vmem:[#allocation2 + $0x790] sm:$0xff] }
 0x467   :  { %3429 = vmatprep.subr.bf16.mxu1 %v3428_v3  ;;  %v1447_v3 = vld [vmem:[#allocation2 + $0x7a8] sm:$0xff]  ;;  %v3462_v5 = vpack.c.bf16 %v1444_v13, %v1442_v2 }
 0x468   :  { %v3464_v6 = vpack.c.bf16 %v1449_v4, %v1447_v3 }
 0x46a   :  { %3431 = vmatpush1.bf16.msra.mxu1 %v3430_v9  ;;  %v1448_v9 = vld [vmem:[#allocation2 + $0x7b0] sm:$0xff] }
 0x46b   :  { %3433 = vmatprep.subr.bf16.mxu1 %v3432_v10  ;;  %v1451_v10 = vld [vmem:[#allocation2 + $0x7c8] sm:$0xff]  ;;  %v3466_v50 = vpack.c.bf16 %v1448_v9, %v1446_v7 }
 0x46c   :  { %v3468_v12 = vpack.c.bf16 %v1453_v11, %v1451_v10 }
 0x46e   :  { %3435 = vmatpush1.bf16.msra.mxu1 %v3434_v15  ;;  %v1452_v15 = vld [vmem:[#allocation2 + $0x7d0] sm:$0xff] }
 0x46f   :  { %3437 = vmatprep.subr.bf16.mxu1 %v3436_v16  ;;  %v1455_v16 = vld [vmem:[#allocation2 + $0x7e8] sm:$0xff]  ;;  %v3470_v40 = vpack.c.bf16 %v1452_v15, %v1450_v14 }
 0x470   :  { %v3472_v18 = vpack.c.bf16 %v1457_v17, %v1455_v16 }
 0x472   :  { %3439 = vmatpush1.bf16.msra.mxu1 %v3438_v58  ;;  %v1456_v58 = vld [vmem:[#allocation2 + $0x7f0] sm:$0xff] }
 0x473   :  { %3441 = vmatprep.subr.bf16.mxu1 %v3440_v20  ;;  %v3474_v20 = vpack.c.bf16 %v1456_v58, %v1454_v19 }
 0x476   :  { %3443 = vmatpush1.bf16.msra.mxu1 %v3442_v26  ;;  %v1580_v26 = vld [vmem:[%s4691_s11 + $0xc8] sm:$0xff] }
 0x477   :  { %3445 = vmatprep.subr.bf16.mxu1 %v3444_v29 }
 0x47a   :  { %3447 = vmatpush1.bf16.msra.mxu1 %v3446_v35  ;;  %v1582_v35 = vld [vmem:[%s4691_s11 + $0xd8] sm:$0xff] }
 0x47b   :  { %3449 = vmatprep.subr.bf16.mxu1 %v3448_v36  ;;  %v4293_v36 = vpack.c.bf16 %v1582_v35, %v1581_v34 }
 0x47e   :  { %3451 = vmatpush1.bf16.msra.mxu1 %v3450_v42  ;;  %v1584_v42 = vld [vmem:[%s4691_s11 + $0xe8] sm:$0xff] }
 0x47f   :  { %3453 = vmatprep.subr.bf16.mxu1 %v3452_v44  ;;  %v4311_v44 = vpack.c.bf16 %v1584_v42, %v1583_v41  ;;  %v1762_v42 = vld [vmem:[%s4690_s10 + $0x20] sm:$0xff] }
 0x482   :  { %3455 = vmatpush1.bf16.msra.mxu1 %v3454_v51  ;;  %v1586_v51 = vld [vmem:[%s4691_s11 + $0xf8] sm:$0xff] }
 0x483   :  { %3457 = vmatprep.subr.bf16.mxu1 %v3456_v52  ;;  %v3504_v52 = vpack.c.bf16 %v1586_v51, %v1585_v28 }
 0x486   :  { %3459 = vmatpush1.bf16.msra.mxu1 %v3458_v61 }
 0x487   :  { %3461 = vmatprep.subr.bf16.mxu1 %v3460_v63 }
 0x48a   :  { %3463 = vmatpush1.bf16.msra.mxu1 %v3462_v5 }
 0x48b   :  { %3465 = vmatprep.subr.bf16.mxu1 %v3464_v6 }
 0x48e   :  { %3467 = vmatpush1.bf16.msra.mxu1 %v3466_v50 }
 0x48f   :  { %3469 = vmatprep.subr.bf16.mxu1 %v3468_v12 }
 0x492   :  { %3471 = vmatpush1.bf16.msra.mxu1 %v3470_v40 }
 0x493   :  { %3473 = vmatprep.subr.bf16.mxu1 %v3472_v18 }
 0x496   :  { %3475 = vmatpush1.bf16.msra.mxu1 %v3474_v20 }
 0x499   :  { %1523 = vmatmul.mubr.f32.vlgmr.msra.gmra.mrb[12].mxu1 %v4178_v38  ;;  %v1562_v38 = vld [vmem:[%s4691_s11 + $0x38] sm:$0xff] }
 0x49a   :  { %1528 = vmatprep.mubr.f32.mxu1 %v4185_v27  ;;  %v4265_v27 = vpack.c.bf16 %v1562_v38, %v1561_v25 }
 0x49c   :  { %3491 = vmatpush3.bf16.msra.mxu0 %v4265_v27 }
 0x49d   :  { %1529 = vmatmul.mubr.f32.gmra.mrb[14].mxu1 %v4182_v21  ;;  %v1579_v21 = vld [vmem:[%s4691_s11 + $0xc0] sm:$0xff] }
 0x49e   :  { %v4275_v29 = vpack.c.bf16 %v1580_v26, %v1579_v21 }
 0x4a0   :  { %3493 = vmatprep.subr.bf16.mxu0 %v4275_v29 }
 0x4a1   :  { %3495 = vmatpush3.bf16.msra.mxu0 %v4283_v33 }
 0x4a2   :  { %3497 = vmatprep.subr.bf16.mxu0 %v4293_v36 }
 0x4a5   :  { %3499 = vmatpush3.bf16.msra.mxu0 %v4301_v22 }
 0x4a6   :  { %3501 = vmatprep.subr.bf16.mxu0 %v4311_v44 }
 0x4a9   :  { %3503 = vmatpush3.bf16.msra.mxu0 %v4319_v47 }
 0x4aa   :  { %3505 = vmatprep.subr.bf16.mxu0 %v3504_v52 }
 0x4ad   :  { %3507 = vmatpush3.bf16.msra.mxu0 %v3506_v56 }
 0x4ae   :  { %3509 = vmatprep.subr.bf16.mxu0 %v4199_v43 }
 0x56c   :  { %v4336_v59 = vpop.f32.mrb[12].mxu1 }
 0x56d   :  { %v1526_v61 = vpop.f32.mrb[13].mxu1  ;;  %v1657_v4 = vmul.f32 %v4336_v59, %v4336_v59 }
 0x56e   :  { %v1658_v7 = vmul.f32 %v1526_v61, %v1526_v61 }
 0x570   :  { %v4338_v63 = vpop.f32.mrb[14].mxu1 }
 0x571   :  { %v1539_v2 = vsel %vm191_vm0, %v4338_v63, 0.0  ;;  %v1659_v13 = vmul.f32 %v4338_v63, %v4338_v63  ;;  %v1532_v3 = vpop.f32.mrb[15].mxu1 }
 0x572   :  { %v1540_v5 = vadd.f32 %v1539_v2, %v4336_v59  ;;  %v1547_v6 = vsel %vm191_vm0, %v1532_v3, 0.0  ;;  %v1660_v43 = vmul.f32 %v1532_v3, %v1532_v3  ;;  %v1751_v3 = vld [vmem:[%s4688_s8] sm:$0x1] }
 0x573   :  { %v1661_v9 = vsel %vm191_vm0, %v1659_v13, 0.0  ;;  %v1548_v10 = vadd.f32 %v1547_v6, %v1526_v61 }
 0x574   :  { %v1541_v11 = vrot.slane %v1540_v5, 4  ;;  %v1662_v50 = vadd.f32 %v1661_v9, %v1657_v4  ;;  %v1669_v12 = vsel %vm191_vm0, %v1660_v43, 0.0  ;;  %v1755_v43 = vld [vmem:[%s4689_s9] sm:$0x1]  ;;  %v3722_v9 = vmov 0.0|0.0  }
 0x575   :  { %v1549_v14 = vrot.slane %v1548_v10, 4  ;;  %v1670_v15 = vadd.f32 %v1669_v12, %v1658_v7 }
 0x576   :  { %v1542_v16 = vadd.f32 %v1541_v11, %v1540_v5  ;;  %v1663_v35 = vrot.slane %v1662_v50, 4 }
 0x577   :  { %v1550_v17 = vadd.f32 %v1549_v14, %v1548_v10  ;;  %v1671_v40 = vrot.slane %v1670_v15, 4 }
 0x578   :  { %v1543_v18 = vrot.slane %v1542_v16, 2  ;;  %v1664_v37 = vadd.f32 %v1663_v35, %v1662_v50  ;;  %v2640_v35 = vld [vmem:[%s4693_s13 + $0xb8] sm:$0xff] }
 0x579   :  { %v1551_v19 = vrot.slane %v1550_v17, 2  ;;  %v1672_v58 = vadd.f32 %v1671_v40, %v1670_v15 }
 0x57a   :  { %v1544_v20 = vadd.f32 %v1543_v18, %v1542_v16 }
 0x57b   :  { %v1552_v53 = vadd.f32 %v1551_v19, %v1550_v17  ;;  %v1673_v23 = vrot.slane %v1672_v58, 2 }
 0x57c   :  { %v1545_v25 = vrot.slane %v1544_v20, 1 }
 0x57d   :  { %v1553_v38 = vrot.slane %v1552_v53, 1  ;;  %v1674_v21 = vadd.f32 %v1673_v23, %v1672_v58 }
 0x57e   :  { %v1546_v32 = vadd.f32 %v1545_v25, %v1544_v20  ;;  %v2635_v25 = vld [vmem:[%s4693_s13 + $0x90] sm:$0xff] }
 0x57f   :  { %v1554_v26 = vadd.f32 %v1553_v38, %v1552_v53  ;;  %v1675_v31 = vrot.slane %v1674_v21, 1  ;;  %v2630_v53 = vld [vmem:[%s4692_s12 + $0x2] sm:$0x3]  ;;  %v2636_v38 = vld [vmem:[%s4693_s13 + $0x98] sm:$0xff] }
 0x581   :  { %1651 = vmatprep.mubr.f32.mxu0 %v1554_v26  ;;  %v1676_v34 = vadd.f32 %v1675_v31, %v1674_v21  ;;  %v3568_v21 = vpack.c.bf16 %v2636_v38, %v2635_v25  ;;  %v2637_v26 = vld [vmem:[%s4693_s13 + $0xa0] sm:$0xff]  ;;  %v2638_v31 = vld [vmem:[%s4693_s13 + $0xa8] sm:$0xff]  ;;  %v2658_v25 = vld [vmem:[%s4693_s13 + $0x130] sm:$0xff] }
 0x582   :  { %1652 = vmatmul.mubr.f32.vlgmr.msra.gmra.mrb[20].mxu0 %v1546_v32  ;;  %v3571_v32 = vpack.c.bf16 %v2638_v31, %v2637_v26  ;;  %v2659_v38 = vld [vmem:[%s4693_s13 + $0x138] sm:$0xff]  ;;  %v2660_v26 = vld [vmem:[%s4693_s13 + $0x140] sm:$0xff]  ;;  %v2661_v31 = vld [vmem:[%s4693_s13 + $0x148] sm:$0xff] }
 0x583   :  { %3511 = vmatpush3.bf16.msra.mxu0 %v4210_v48  ;;  %1741 = vmatprep.mubr.f32.mxu0 %v1676_v34  ;;  %v1665_v48 = vrot.slane %v1664_v37, 2  ;;  %v2639_v34 = vld [vmem:[%s4693_s13 + $0xb0] sm:$0xff] }
 0x584   :  { %3513 = vmatprep.subr.bf16.mxu0 %v4212_v49 }
 0x585   :  { %v1666_v49 = vadd.f32 %v1665_v48, %v1664_v37  ;;  %v3574_v37 = vpack.c.bf16 %v2640_v35, %v2639_v34  ;;  %v2641_v48 = vld [vmem:[%s4693_s13 + $0xc0] sm:$0xff]  ;;  %v2662_v34 = vld [vmem:[%s4693_s13 + $0x150] sm:$0xff]  ;;  %v2663_v35 = vld [vmem:[%s4693_s13 + $0x158] sm:$0xff] }
 0x587   :  { %3515 = vmatpush3.bf16.msra.mxu0 %v4228_v57  ;;  %v1667_v57 = vrot.slane %v1666_v49, 1 }
 0x588   :  { %3517 = vmatprep.subr.bf16.mxu0 %v4231_v60 }
 0x589   :  { %v1668_v60 = vadd.f32 %v1667_v57, %v1666_v49  ;;  %v2642_v49 = vld [vmem:[%s4693_s13 + $0xc8] sm:$0xff] }
 0x58a   :  { %v3577_v57 = vpack.c.bf16 %v2642_v49, %v2641_v48  ;;  %v2664_v48 = vld [vmem:[%s4693_s13 + $0x160] sm:$0xff]  ;;  %v2665_v49 = vld [vmem:[%s4693_s13 + $0x168] sm:$0xff] }
 0x58b   :  { %3519 = vmatpush3.bf16.msra.mxu0 %v4240_v8  ;;  %v1759_v8 = vld [vmem:[%s4690_s10 + $0x8] sm:$0xff] }
 0x58c   :  { %3521 = vmatprep.subr.bf16.mxu0 %v4257_v24  ;;  %v1761_v24 = vld [vmem:[%s4690_s10 + $0x18] sm:$0xff] }
 0x58f   :  { %3523 = vmatpush3.bf16.msra.mxu0 %v4265_v27  ;;  %v1758_v27 = vld [vmem:[%s4690_s10] sm:$0xff] }
 0x590   :  { %3525 = vmatprep.subr.bf16.mxu0 %v4275_v29  ;;  %v3540_v29 = vpack.c.bf16 %v1761_v24, %v1759_v8  ;;  %v2644_v8 = vld [vmem:[%s4693_s13 + $0xd8] sm:$0xff] }
 0x593   :  { %3527 = vmatpush3.bf16.msra.mxu0 %v4283_v33  ;;  %v1760_v33 = vld [vmem:[%s4690_s10 + $0x10] sm:$0xff] }
 0x594   :  { %3529 = vmatprep.subr.bf16.mxu0 %v4293_v36  ;;  %v1763_v36 = vld [vmem:[%s4690_s10 + $0x28] sm:$0xff] }
 0x595   :  { %v3544_v41 = vpack.c.bf16 %v1765_v39, %v1763_v36  ;;  %v2647_v36 = vld [vmem:[%s4693_s13 + $0xf0] sm:$0xff]  ;;  %v2648_v39 = vld [vmem:[%s4693_s13 + $0xf8] sm:$0xff] }
 0x597   :  { %3531 = vmatpush3.bf16.msra.mxu0 %v4301_v22  ;;  %v3542_v22 = vpack.c.bf16 %v1760_v33, %v1758_v27  ;;  %v2645_v27 = vld [vmem:[%s4693_s13 + $0xe0] sm:$0xff] }
 0x598   :  { %3533 = vmatprep.subr.bf16.mxu0 %v4311_v44  ;;  %v1764_v44 = vld [vmem:[%s4690_s10 + $0x30] sm:$0xff] }
 0x599   :  { %v3546_v45 = vpack.c.bf16 %v1764_v44, %v1762_v42  ;;  %v2006_v42 = vld [vmem:[%s4693_s13 + $0x8] sm:$0xff] }
 0x59b   :  { %3535 = vmatpush3.bf16.msra.mxu0 %v4319_v47 }
 0x59c   :  { %3537 = vmatprep.subr.bf16.mxu0 %v3504_v52 }
 0x59f   :  { %3539 = vmatpush3.bf16.msra.mxu0 %v3506_v56 }
 0x5a0   :  { %3541 = vmatprep.subr.bf16.mxu0 %v3540_v29 }
 0x5a2   :  { %1742 = vmatmul.mubr.f32.vlgmr.msra.gmra.mrb[22].mxu0 %v1668_v60  ;;  %v2643_v60 = vld [vmem:[%s4693_s13 + $0xd0] sm:$0xff] }
 0x5a3   :  { %1834 = vmatprep.mubr.f32.mxu0 %v3720_v0  ;;  %3543 = vmatpush1.bf16.msra.mxu0 %v3542_v22  ;;  %v3580_v24 = vpack.c.bf16 %v2644_v8, %v2643_v60  ;;  %v2666_v60 = vld [vmem:[%s4693_s13 + $0x170] sm:$0xff]  ;;  %v2667_v8 = vld [vmem:[%s4693_s13 + $0x178] sm:$0xff] }
 0x5a4   :  { %3545 = vmatprep.subr.bf16.mxu0 %v3544_v41 }
 0x5a7   :  { %3547 = vmatpush1.bf16.msra.mxu0 %v3546_v45 }
 0x5a8   :  { %3549 = vmatprep.subr.bf16.mxu0 %v3540_v29  ;;  %v2646_v29 = vld [vmem:[%s4693_s13 + $0xe8] sm:$0xff] }
 0x5a9   :  { %v3583_v33 = vpack.c.bf16 %v2646_v29, %v2645_v27 }
 0x655   :  { %v2790_v46 = vpop.f32.mrb[20].mxu0 }
 0x656   :  { %v2791_v47 = vpop.f32.mrb[21].mxu0 }
 0x657   :  { %v2792_v28 = vadd.f32 %v2791_v47, %v2790_v46  ;;  %v2007_v47 = vld [vmem:[%s4693_s13 + $0x10] sm:$0xff] }
 0x659   :  { %v1747_v51 = vmul.f32 0.02, %v2792_v28  ;;  %v2008_v28 = vld [vmem:[%s4693_s13 + $0x18] sm:$0xff] }
 0x65b   :  { %v1749_v56 = vmul.f32 %v1747_v51, %v1747_v51 }
 0x675   :  { %v2825_v52 = vpop.f32.mrb[22].mxu0 }
 0x676   :  { %v2826_v54 = vpop.f32.mrb[23].mxu0 }
 0x677   :  { %v2827_v55 = vadd.f32 %v2826_v54, %v2825_v52  ;;  %v3592_v54 = vpack.c.bf16 %v2008_v28, %v2007_v47  ;;  %v2673_v47 = vld [vmem:[%s4693_s13 + $0x190] sm:$0xff]  ;;  %v2674_v28 = vld [vmem:[%s4693_s13 + $0x198] sm:$0xff] }
 0x678   :  { %v3648_v30 = vpack.c.bf16 %v2674_v28, %v2673_v47 }
 0x679   :  { %v1748_v61 = vmul.f32 0.02, %v2827_v55  ;;  %v2009_v55 = vld [vmem:[%s4693_s13 + $0x20] sm:$0xff] }
 0x67b   :  { %v1750_v2 = vsub.f32 %v1748_v61, %v1749_v56  ;;  %v2010_v56 = vld [vmem:[%s4693_s13 + $0x28] sm:$0xff] }
 0x67c   :  { %v3595_v61 = vpack.c.bf16 %v2010_v56, %v2009_v55  ;;  %v2679_v56 = vld [vmem:[%s4693_s13 + $0x1c0] sm:$0xff] }
 0x67d   :  { %v1752_v13 = vadd.f32 1e-05, %v1750_v2  ;;  %v2011_v2 = vld [vmem:[%s4693_s13 + $0x30] sm:$0xff] }
 0x67f   :  { %3689 = vrsqrt.f32 %v1752_v13  ;;  %v2012_v13 = vld [vmem:[%s4693_s13 + $0x38] sm:$0xff] }
 0x689   :  { %v3690_v4 = vpop.eup %3689 }
 0x68a   :  { %v1754_v5 = vmul.f32 %v3690_v4, %v1751_v3  ;;  %v3598_v3 = vpack.c.bf16 %v2012_v13, %v2011_v2  ;;  %v2013_v4 = vld [vmem:[%s4693_s13 + $0x40] sm:$0xff]  ;;  %v2681_v13 = vld [vmem:[%s4693_s13 + $0x1d0] sm:$0xff] }
 0x68c   :  { %2626 = vmatmul.mubr.msk.f32.vlgmr.msra.gmra.mrb[24].mxu0 %vm1766_vm5, %v1754_v5  ;;  %v1756_v6 = vmul.f32 %v1754_v5, %v1747_v51  ;;  %v2014_v5 = vld [vmem:[%s4693_s13 + $0x48] sm:$0xff] }
 0x68d   :  { %3551 = vmatpush1.bf16.msra.mxu0 %v3542_v22  ;;  %1907 = vmatprep.mubr.f32.mxu0 %v3720_v0  ;;  %v3586_v22 = vpack.c.bf16 %v2648_v39, %v2647_v36 }
 0x68e   :  { %3553 = vmatprep.subr.bf16.mxu0 %v3544_v41  ;;  %v1757_v7 = vsub.f32 %v1755_v43, %v1756_v6  ;;  %v2005_v41 = vld [vmem:[%s4693_s13] sm:$0xff]  ;;  %v3601_v6 = vpack.c.bf16 %v2014_v5, %v2013_v4  ;;  %v2015_v43 = vld [vmem:[%s4693_s13 + $0x50] sm:$0xff] }
 0x68f   :  { %v3589_v46 = vpack.c.bf16 %v2006_v42, %v2005_v41  ;;  %v2672_v41 = vld [vmem:[%s4693_s13 + $0x188] sm:$0xff]  ;;  %v2683_v5 = vld [vmem:[%s4693_s13 + $0x1e0] sm:$0xff] }
 0x691   :  { %3555 = vmatpush1.bf16.msra.mxu0 %v3546_v45 }
 0x692   :  { %3556 = vmatprep.subr.bf16.mxu0 %v3722_v9 }
 0x694   :  { %2627 = vmatmul.mubr.msk.f32.vlgmr.msra.gmra.mrb[26].mxu0 %vm1766_vm5, %v1757_v7  ;;  %v2016_v7 = vld [vmem:[%s4693_s13 + $0x58] sm:$0xff] }
 0x695   :  { %2912 = vmatprep.mubr.msk.f32.mxu0 %vm3723_vm6, %v3720_v0 }
 0x75f   :  { %v1836_v10 = vpop.f32.mrb[24].mxu0 }
 0x760   :  { %v1916_v11 = vrot.slane %v1836_v10, %v4091_v1  ;;  %v1838_v50 = vpop.f32.mrb[25].mxu0  ;;  %v3604_v10 = vpack.c.bf16 %v2016_v7, %v2015_v43  ;;  %v2685_v7 = vld [vmem:[%s4693_s13 + $0x1f0] sm:$0xff] }
 0x761   :  { %v2018_v50 = vld [vmem:[%s4693_s13 + $0x68] sm:$0xff] }
 0x762   :  { %v1917_v12 = vmul.f32 %v1916_v11, %v4336_v59  ;;  %v1918_v14 = vmul.f32 %v1916_v11, %v4338_v63  ;;  %v1927_v59 = vld [vmem:[%s4692_s12] sm:$0x3]  ;;  %v2634_v63 = vld [vmem:[%s4693_s13 + $0x88] sm:$0xff] }
 0x763   :  { %v2017_v11 = vld [vmem:[%s4693_s13 + $0x60] sm:$0xff] }
 0x767   :  { %v1909_v15 = vpop.f32.mrb[26].mxu0 }
 0x768   :  { %v1922_v16 = vrot.slane %v1909_v15, %v4091_v1  ;;  %v1911_v17 = vpop.f32.mrb[27].mxu0  ;;  %v2633_v1 = vld [vmem:[%s4693_s13 + $0x80] sm:$0xff]  ;;  %v2020_v15 = vld [vmem:[%s4693_s13 + $0x78] sm:$0xff] }
 0x769   :  { %v3565_v23 = vpack.c.bf16 %v2634_v63, %v2633_v1  ;;  %v2649_v17 = vld [vmem:[%s4692_s12 + $0x4] sm:$0x3] }
 0x76a   :  { %v1923_v40 = vadd.f32 %v1922_v16, %v1917_v12  ;;  %v1924_v18 = vadd.f32 %v1922_v16, %v1918_v14  ;;  %v3607_v12 = vpack.c.bf16 %v2018_v50, %v2017_v11  ;;  %v2019_v14 = vld [vmem:[%s4693_s13 + $0x70] sm:$0xff]  ;;  %v2656_v63 = vld [vmem:[%s4693_s13 + $0x120] sm:$0xff] }
 0x76b   :  { %v3610_v16 = vpack.c.bf16 %v2020_v15, %v2019_v14 }
 0x76c   :  { %v1925_v19 = vmax.f32 %v1923_v40, 0.0  ;;  %v1926_v58 = vmax.f32 %v1924_v18, 0.0  ;;  %v2652_v40 = vld [vmem:[%s4693_s13 + $0x100] sm:$0xff]  ;;  %v2653_v18 = vld [vmem:[%s4693_s13 + $0x108] sm:$0xff] }
 0x76e   :  { %v4402_v20 = vpack.c.bf16 %v1926_v58, %v1925_v19  ;;  %v2654_v19 = vld [vmem:[%s4693_s13 + $0x110] sm:$0xff]  ;;  %v3617_v58 = vpack.c.bf16 %v2653_v18, %v2652_v40 }
 0x770   :  { %3559 = vmatpush3.bf16.msk.msra.mxu0 %vm4106_vm3, %v4402_v20 }
 0x771   :  { %3560 = vmatprep.subr.bf16.mxu0 %v3722_v9 }
 0x773   :  { %2913 = vmatmul.mubr.msk.f32.vlgmr.msra.gmra.mrb[28].mxu0 %vm1928_vm7, %v1927_v59  ;;  %v2655_v59 = vld [vmem:[%s4693_s13 + $0x118] sm:$0xff] }
 0x774   :  { %3563 = vmatpush3.bf16.msk.msra.mxu0 %vm4106_vm3, %v4402_v20  ;;  %2919 = vmatprep.mubr.msk.f32.mxu0 %vm3723_vm6, %v3720_v0  ;;  %v3620_v1 = vpack.c.bf16 %v2655_v59, %v2654_v19 }
 0x775   :  { %3564 = vmatprep.subr.bf16.mxu0 %v3722_v9 }
 0x777   :  { %2920 = vmatmul.mubr.msk.f32.vlgmr.msra.gmra.mrb[30].mxu0 %vm1928_vm7, %v2630_v53  ;;  %v2657_v53 = vld [vmem:[%s4693_s13 + $0x128] sm:$0xff] }
 0x778   :  { %3566 = vmatpush3.bf16.msra.mxu0 %v3565_v23  ;;  %2954 = vmatprep.mubr.msk.f32.mxu0 %vm3723_vm6, %v3720_v0  ;;  %v3623_v23 = vpack.c.bf16 %v2657_v53, %v2656_v63 }
 0x779   :  { %3567 = vmatprep.subr.bf16.mxu0 %v3722_v9 }
 0x77c   :  { %3569 = vmatpush3.bf16.msra.mxu0 %v3568_v21  ;;  %v3626_v21 = vpack.c.bf16 %v2659_v38, %v2658_v25 }
 0x77d   :  { %3570 = vmatprep.subr.bf16.mxu0 %v3722_v9 }
 0x780   :  { %3572 = vmatpush3.bf16.msra.mxu0 %v3571_v32  ;;  %v3629_v32 = vpack.c.bf16 %v2661_v31, %v2660_v26 }
 0x781   :  { %3573 = vmatprep.subr.bf16.mxu0 %v3722_v9 }
 0x784   :  { %3575 = vmatpush3.bf16.msra.mxu0 %v3574_v37  ;;  %v3632_v37 = vpack.c.bf16 %v2663_v35, %v2662_v34 }
 0x785   :  { %3576 = vmatprep.subr.bf16.mxu0 %v3722_v9 }
 0x788   :  { %3578 = vmatpush3.bf16.msra.mxu0 %v3577_v57  ;;  %v3635_v57 = vpack.c.bf16 %v2665_v49, %v2664_v48 }
 0x789   :  { %3579 = vmatprep.subr.bf16.mxu0 %v3722_v9 }
 0x78c   :  { %3581 = vmatpush3.bf16.msra.mxu0 %v3580_v24  ;;  %v3638_v24 = vpack.c.bf16 %v2667_v8, %v2666_v60 }
 0x78d   :  { %3582 = vmatprep.subr.bf16.mxu0 %v3722_v9 }
 0x790   :  { %3584 = vmatpush3.bf16.msra.mxu0 %v3583_v33 }
 0x791   :  { %3585 = vmatprep.subr.bf16.mxu0 %v3722_v9 }
 0x794   :  { %3587 = vmatpush3.bf16.msra.mxu0 %v3586_v22  ;;  %v2671_v22 = vld [vmem:[%s4693_s13 + $0x180] sm:$0xff] }
 0x795   :  { %3588 = vmatprep.subr.bf16.mxu0 %v3722_v9 }
 0x846   :  { %v2001_v44 = vpop.f32.mrb[28].mxu0 }
 0x847   :  { %v2914_v45 = vpop.f32.mrb[29].mxu0 }
 0x848   :  { %v2668_v45 = vld [vmem:[%s4692_s12 + $0x6] sm:$0x3] }
 0x84a   :  { %v2092_v51 = vpop.f32.mrb[30].mxu0 }
 0x84b   :  { %v2921_v52 = vpop.f32.mrb[31].mxu0  ;;  %2955 = vmatmul.mubr.f32.vlgmr.msra.gmra.mrb[32].mxu0 %v2092_v51  ;;  %v2676_v51 = vld [vmem:[%s4693_s13 + $0x1a8] sm:$0xff] }
 0x84c   :  { %3590 = vmatpush3.bf16.msra.mxu0 %v3589_v46  ;;  %2989 = vmatprep.mubr.msk.f32.mxu0 %vm3723_vm6, %v3720_v0  ;;  %v3645_v46 = vpack.c.bf16 %v2672_v41, %v2671_v22 }
 0x84d   :  { %3591 = vmatprep.subr.bf16.mxu0 %v3722_v9 }
 0x850   :  { %3593 = vmatpush3.bf16.msra.mxu0 %v3592_v54  ;;  %v2677_v54 = vld [vmem:[%s4693_s13 + $0x1b0] sm:$0xff] }
 0x851   :  { %3594 = vmatprep.subr.bf16.mxu0 %v3722_v9 }
 0x854   :  { %3596 = vmatpush3.bf16.msra.mxu0 %v3595_v61  ;;  %v2680_v61 = vld [vmem:[%s4693_s13 + $0x1c8] sm:$0xff] }
 0x855   :  { %3597 = vmatprep.subr.bf16.mxu0 %v3722_v9  ;;  %v3657_v2 = vpack.c.bf16 %v2680_v61, %v2679_v56 }
 0x858   :  { %3599 = vmatpush3.bf16.msra.mxu0 %v3598_v3  ;;  %v2682_v3 = vld [vmem:[%s4693_s13 + $0x1d8] sm:$0xff] }
 0x859   :  { %3600 = vmatprep.subr.bf16.mxu0 %v3722_v9  ;;  %v3660_v4 = vpack.c.bf16 %v2682_v3, %v2681_v13 }
 0x85c   :  { %3602 = vmatpush3.bf16.msra.mxu0 %v3601_v6  ;;  %v2684_v6 = vld [vmem:[%s4693_s13 + $0x1e8] sm:$0xff] }
 0x85d   :  { %3603 = vmatprep.subr.bf16.mxu0 %v3722_v9  ;;  %v3663_v43 = vpack.c.bf16 %v2684_v6, %v2683_v5 }
 0x860   :  { %3605 = vmatpush3.bf16.msra.mxu0 %v3604_v10  ;;  %v2686_v10 = vld [vmem:[%s4693_s13 + $0x1f8] sm:$0xff] }
 0x861   :  { %3606 = vmatprep.subr.bf16.mxu0 %v3722_v9  ;;  %v3666_v11 = vpack.c.bf16 %v2686_v10, %v2685_v7 }
 0x864   :  { %3608 = vmatpush3.bf16.msra.mxu0 %v3607_v12 }
 0x865   :  { %3609 = vmatprep.subr.bf16.mxu0 %v3722_v9 }
 0x868   :  { %3611 = vmatpush3.bf16.msra.mxu0 %v3610_v16 }
 0x869   :  { %3612 = vmatprep.subr.bf16.mxu0 %v3722_v9 }
 0x86b   :  { %2990 = vmatmul.mubr.f32.vlgmr.msra.gmra.mrb[34].mxu0 %v2001_v44 }
 0x86c   :  { %3615 = vmatpush3.bf16.msk.msra.mxu0 %vm4106_vm3, %v4402_v20  ;;  %2996 = vmatprep.mubr.msk.f32.mxu0 %vm3723_vm6, %v3720_v0 }
 0x86d   :  { %3616 = vmatprep.subr.bf16.mxu0 %v3722_v9 }
 0x86f   :  { %2997 = vmatmul.mubr.msk.f32.vlgmr.msra.gmra.mrb[36].mxu0 %vm1928_vm7, %v2649_v17 }
 0x870   :  { %3031 = vmatprep.mubr.msk.f32.mxu0 %vm3723_vm6, %v3720_v0  ;;  %3618 = vmatpush3.bf16.msra.mxu0 %v3617_v58 }
 0x871   :  { %3619 = vmatprep.subr.bf16.mxu0 %v3722_v9 }
 0x874   :  { %3621 = vmatpush3.bf16.msra.mxu0 %v3620_v1  ;;  %v2588_v1 = vand.u32 127, %v574_v62 }
 0x875   :  { %3622 = vmatprep.subr.bf16.mxu0 %v3722_v9 }
 0x876   :  { %vm2589_vm8 = vcmp.ge.s32.totalorder %v2588_v1, 32  ;;  %vm2590_vm9 = vcmp.lt.s32.totalorder %v2588_v1, 64 }
 0x877   :  { %vm2591_vm10 = vmand %vm2589_vm8, %vm2590_vm9 }
 0x878   :  { %3624 = vmatpush3.bf16.msra.mxu0 %v3623_v23 }
 0x879   :  { %3625 = vmatprep.subr.bf16.mxu0 %v3722_v9 }
 0x87c   :  { %3627 = vmatpush3.bf16.msra.mxu0 %v3626_v21 }
 0x87d   :  { %3628 = vmatprep.subr.bf16.mxu0 %v3722_v9 }
 0x880   :  { %3630 = vmatpush3.bf16.msra.mxu0 %v3629_v32 }
 0x881   :  { %3631 = vmatprep.subr.bf16.mxu0 %v3722_v9 }
 0x884   :  { %3633 = vmatpush3.bf16.msra.mxu0 %v3632_v37 }
 0x885   :  { %3634 = vmatprep.subr.bf16.mxu0 %v3722_v9 }
 0x888   :  { %3636 = vmatpush3.bf16.msra.mxu0 %v3635_v57 }
 0x889   :  { %3637 = vmatprep.subr.bf16.mxu0 %v3722_v9 }
 0x88c   :  { %3639 = vmatpush3.bf16.msra.mxu0 %v3638_v24 }
 0x88d   :  { %3640 = vmatprep.subr.bf16.mxu0 %v3722_v9 }
 0x91e   :  { %v2179_v27 = vpop.f32.mrb[32].mxu0 }
 0x91f   :  { %v2956_v29 = vpop.f32.mrb[33].mxu0 }
 0x93e   :  { %v2249_v33 = vpop.f32.mrb[34].mxu0 }
 0x93f   :  { %v2250_v36 = vadd.f32 %v2249_v33, %v2179_v27  ;;  %v2991_v39 = vpop.f32.mrb[35].mxu0 }
 0x942   :  { %v2324_v42 = vpop.f32.mrb[36].mxu0 }
 0x943   :  { %v2998_v44 = vpop.f32.mrb[37].mxu0  ;;  %3032 = vmatmul.mubr.f32.vlgmr.msra.gmra.mrb[38].mxu0 %v2324_v42 }
 0x944   :  { %3643 = vmatpush3.bf16.msk.msra.mxu0 %vm4106_vm3, %v4402_v20  ;;  %3038 = vmatprep.mubr.msk.f32.mxu0 %vm3723_vm6, %v3720_v0  ;;  %v2675_v20 = vld [vmem:[%s4693_s13 + $0x1a0] sm:$0xff] }
 0x945   :  { %3644 = vmatprep.subr.bf16.mxu0 %v3722_v9  ;;  %v3651_v52 = vpack.c.bf16 %v2676_v51, %v2675_v20 }
 0x947   :  { %3039 = vmatmul.mubr.msk.f32.vlgmr.msra.gmra.mrb[40].mxu0 %vm1928_vm7, %v2668_v45 }
 0x948   :  { %3646 = vmatpush3.bf16.msra.mxu0 %v3645_v46  ;;  %3073 = vmatprep.mubr.msk.f32.mxu0 %vm3723_vm6, %v3720_v0  ;;  %v2678_v0 = vld [vmem:[%s4693_s13 + $0x1b8] sm:$0xff] }
 0x949   :  { %3647 = vmatprep.subr.bf16.mxu0 %v3722_v9  ;;  %v3654_v55 = vpack.c.bf16 %v2678_v0, %v2677_v54 }
 0x94c   :  { %3649 = vmatpush3.bf16.msra.mxu0 %v3648_v30 }
 0x94d   :  { %3650 = vmatprep.subr.bf16.mxu0 %v3722_v9 }
 0x950   :  { %3652 = vmatpush3.bf16.msra.mxu0 %v3651_v52 }
 0x951   :  { %3653 = vmatprep.subr.bf16.mxu0 %v3722_v9 }
 0x954   :  { %3655 = vmatpush3.bf16.msra.mxu0 %v3654_v55 }
 0x955   :  { %3656 = vmatprep.subr.bf16.mxu0 %v3722_v9 }
 0x958   :  { %3658 = vmatpush3.bf16.msra.mxu0 %v3657_v2 }
 0x959   :  { %3659 = vmatprep.subr.bf16.mxu0 %v3722_v9 }
 0x95c   :  { %3661 = vmatpush3.bf16.msra.mxu0 %v3660_v4 }
 0x95d   :  { %3662 = vmatprep.subr.bf16.mxu0 %v3722_v9 }
 0x960   :  { %3664 = vmatpush3.bf16.msra.mxu0 %v3663_v43 }
 0x961   :  { %3665 = vmatprep.subr.bf16.mxu0 %v3722_v9  ;;  %v2687_v9 = vld [vmem:[%s4694_s14] ss:$0 sm:$0xff] }
 0x964   :  { %3667 = vmatpush3.bf16.msra.mxu0 %v3666_v11 }
 0xa16   :  { %v2411_v50 = vpop.f32.mrb[38].mxu0 }
 0xa17   :  { %v2415_v12 = vadd.f32 %v2411_v50, %v2250_v36  ;;  %v3033_v14 = vpop.f32.mrb[39].mxu0 }
 0xa1a   :  { %v2487_v15 = vpop.f32.mrb[40].mxu0 }
 0xa1b   :  { %v3040_v16 = vpop.f32.mrb[41].mxu0  ;;  %3074 = vmatmul.mubr.f32.vlgmr.msra.gmra.mrb[42].mxu0 %v2487_v15 }
 0xaee   :  { %v2574_v17 = vpop.f32.mrb[42].mxu0 }
 0xaef   :  { %v2578_v40 = vadd.f32 %v2574_v17, %v2415_v12  ;;  %v3075_v18 = vpop.f32.mrb[43].mxu0 }
 0xaf1   :  { %v2586_v19 = vadd.f32 %v2687_v9, %v2578_v40 }
 0xaf3   :  { %v2592_v58 = vmul.f32 0.5, %v2586_v19 }
 0xaf5   :  { %v2593_v59 = vmul.f32 1.442695, %v2592_v58 }
 0xaf7   :  { %3691 = vpow2.f32 %v2593_v59 }
 0xb01   :  { %v3692_v63 = vpop.eup %3691 }
 0xb02   :  { %v2595_v53 = vsel %vm2591_vm10, %v3692_v63, %v2586_v19 }
 0xb03   :  { %2596 = vst [vmem:[%s4695_s15] sm:$0x3] %v2595_v53 }
 0xb04   :  { %2601 = vsyncpa [#allocation3], 1 }

</bundles_post_ra>
